<compile_context>
chip_gen: v6e
topology: v6e:2x2x1
jax: 0.10.0
libtpu: 0.0.40
codegen_flags: <defaults>
</compile_context>

<pallas_src>
import functools

import jax
import jax.numpy as jnp
import numpy as np
from jax.experimental import pallas as pl
from jax.experimental.pallas import tpu as pltpu


# ---------------------------------------------------------------------------
# Kernel: one full post-norm encoder layer
#   cached K/V (per batch row) -> Q proj -> batched-head attention
#   -> add&norm -> ReLU FFN -> add&norm
# Grid = (batch row, query block); K/V use the full sequence from VMEM scratch.
# ---------------------------------------------------------------------------
def _encoder_layer_kernel(x_full_ref, x_blk_ref,
                          wq_ref, bq_ref, wkv_ref, bkv_ref,
                          wo_ref, bo_ref,
                          g1_ref, beta1_ref,
                          w1_ref, bf1_ref, w2_ref, bf2_ref,
                          g2_ref, beta2_ref,
                          o_ref,
                          k_scratch, v_scratch,
                          *, num_heads, eps=1e-5):
    qi = pl.program_id(1)
    H = num_heads
    _, S, D = x_full_ref.shape
    TS = x_blk_ref.shape[1]
    Dh = D // H

    # ---- K/V projection: done ONCE per batch row (qi == 0), cached in bf16
    # VMEM scratch in [H, S, Dh] head layout, reused by all query blocks.
    @pl.when(qi == 0)
    def _():
        x_full_bf = x_full_ref[0].astype(jnp.bfloat16)                 # [S, D]
        kv = jnp.dot(x_full_bf, wkv_ref[...],
                     preferred_element_type=jnp.float32) + bkv_ref[...]  # [S, 2D]
        k_scratch[...] = (kv[:, :D].reshape(S, H, Dh)
                          .swapaxes(0, 1).astype(jnp.bfloat16))
        v_scratch[...] = (kv[:, D:].reshape(S, H, Dh)
                          .swapaxes(0, 1).astype(jnp.bfloat16))

    # ---- Q projection for this block (1/sqrt(Dh) pre-folded into wq / bq) --
    xq = x_blk_ref[0]                                                   # [TS, D] f32
    q = jnp.dot(xq.astype(jnp.bfloat16), wq_ref[...],
                preferred_element_type=jnp.float32) + bq_ref[...]
    qh = q.reshape(TS, H, Dh).swapaxes(0, 1).astype(jnp.bfloat16)       # [H,TS,Dh]

    # ---- batched-head attention (deferred softmax normalization) ----------
    s = jnp.einsum("hqd,hkd->hqk", qh, k_scratch[...],
                   preferred_element_type=jnp.float32)                  # [H,TS,S]
    # TODO(synk): additive attention-mask support (reference always passes None).
    m = jnp.max(s, axis=-1, keepdims=True)
    e = jnp.exp(s - m)                                                  # f32
    l = jnp.sum(e, axis=-1, keepdims=True)                              # [H,TS,1]
    o_h = jnp.einsum("hqk,hkd->hqd", e.astype(jnp.bfloat16), v_scratch[...],
                     preferred_element_type=jnp.float32)                # [H,TS,Dh]
    o_h = o_h * pl.reciprocal(l, approx=True)   # normalize AFTER the PV matmul

    # Merge heads back to [TS, D] and do ONE dense output projection.
    attn = o_h.swapaxes(0, 1).reshape(TS, D)
    attn = jnp.dot(attn.astype(jnp.bfloat16), wo_ref[...],
                   preferred_element_type=jnp.float32) + bo_ref[...]

    # ---- residual + layer norm 1 (f32) -------------------------------------
    h1 = xq + attn
    mu1 = jnp.mean(h1, axis=-1, keepdims=True)
    var1 = jnp.mean(jnp.square(h1 - mu1), axis=-1, keepdims=True)
    h1n = (h1 - mu1) * jax.lax.rsqrt(var1 + eps) * g1_ref[...] + beta1_ref[...]

    # ---- feed-forward (ReLU), bf16 matmuls, f32 accumulation ----------------
    f = jnp.dot(h1n.astype(jnp.bfloat16), w1_ref[...],
                preferred_element_type=jnp.float32) + bf1_ref[...]
    f = jnp.maximum(f, 0.0)
    f = jnp.dot(f.astype(jnp.bfloat16), w2_ref[...],
                preferred_element_type=jnp.float32) + bf2_ref[...]

    # ---- residual + layer norm 2 (f32) --------------------------------------
    h2 = h1n + f
    mu2 = jnp.mean(h2, axis=-1, keepdims=True)
    var2 = jnp.mean(jnp.square(h2 - mu2), axis=-1, keepdims=True)
    o_ref[0] = (h2 - mu2) * jax.lax.rsqrt(var2 + eps) * g2_ref[...] + beta2_ref[...]


# ---------------------------------------------------------------------------
# Generation-aware tiling / VMEM budgeting
# ---------------------------------------------------------------------------
def _tpu_kind():
    try:
        return jax.devices()[0].device_kind.lower()
    except Exception:
        return ""


def _pick_q_block(S):
    # Block second-to-last dim must be a multiple of 8 or equal S.
    # v6e (256-wide MXU, 128 MiB VMEM) benefits from 256-row query tiles;
    # v5e/v7x stay at 128 (full MXU width on v5e, tight VMEM on v7x).
    kind = _tpu_kind()
    pref = 256 if "v6" in kind else 128
    for blk in (pref, 128):
        if S > blk and S % blk == 0:
            return blk
    return S


def _vmem_limit_bytes():
    kind = _tpu_kind()
    if "v5" in kind or "v6" in kind:
        return 96 * 1024 * 1024     # 128 MiB physical VMEM -> generous budget
    return 48 * 1024 * 1024         # v7x (64 MiB physical) / unknown: headroom


def encoder_layer(x, lp, num_heads, q_block, vmem_limit):
    """x: [B, S, D] float32, lp: dict of prepared per-layer params."""
    B, S, D = x.shape
    H = num_heads
    assert D % H == 0, "model_dim must be divisible by num_heads"
    assert S % q_block == 0
    Dh = D // H

    param_order = ["wq", "bq", "wkv", "bkv", "wo", "bo", "g1", "beta1",
                   "w1", "bf1", "w2", "bf2", "g2", "beta2"]
    params = [lp[n] for n in param_order]

    def const_spec(arr):
        zeros = (0,) * arr.ndim
        # Grid-constant blocks never re-DMA -> single-buffer them to halve
        # their VMEM footprint (critical on v7x's 64 MiB VMEM).
        return pl.BlockSpec(arr.shape, lambda b, qi, _z=zeros: _z,
                            pipeline_mode=pl.Buffered(1))

    in_specs = ([pl.BlockSpec((1, S, D), lambda b, qi: (b, 0, 0)),        # full row (K/V src)
                 pl.BlockSpec((1, q_block, D), lambda b, qi: (b, qi, 0))]  # query block
                + [const_spec(p) for p in params])

    return pl.pallas_call(
        functools.partial(_encoder_layer_kernel, num_heads=num_heads),
        out_shape=jax.ShapeDtypeStruct((B, S, D), jnp.float32),
        grid=(B, S // q_block),
        in_specs=in_specs,
        out_specs=pl.BlockSpec((1, q_block, D), lambda b, qi: (b, qi, 0)),
        scratch_shapes=[pltpu.VMEM((H, S, Dh), jnp.bfloat16),   # K cache
                        pltpu.VMEM((H, S, Dh), jnp.bfloat16)],  # V cache
        compiler_params=pltpu.CompilerParams(
            # Batch rows may be split across TensorCores; query blocks must be
            # sequential so the per-row K/V scratch written at qi==0 is valid.
            dimension_semantics=("parallel", "arbitrary"),
            vmem_limit_bytes=vmem_limit),
    )(x, x, *params)


# ---------------------------------------------------------------------------
# Parameter setup (deterministic, in-script) + plain-JAX glue
# ---------------------------------------------------------------------------
def make_positional_encoding(max_seq_len, model_dim):
    # Mirrors TransformerEncoder.create_positional_encoding
    position = np.arange(max_seq_len, dtype=np.float32)[:, None]
    div_term = np.exp(np.arange(0, model_dim, 2, dtype=np.float32)
                      * (-np.log(10000.0) / model_dim))
    pe = np.zeros((max_seq_len, model_dim), dtype=np.float32)
    pe[:, 0::2] = np.sin(position * div_term)
    pe[:, 1::2] = np.cos(position * div_term)
    return jnp.asarray(pe)        # [max_seq_len, model_dim]


def init_params(key, num_layers, model_dim, ffn_dim, vocab_size):
    keys = jax.random.split(key, 1 + num_layers)
    params = {"embedding": jax.random.normal(keys[0], (vocab_size, model_dim),
                                             jnp.float32) * 0.02}
    layers = []
    for li in range(num_layers):
        lk = jax.random.split(keys[1 + li], 6)
        D, F = model_dim, ffn_dim
        layers.append({
            # linear weights stored as (in, out): y = x @ W + b
            "wq": jax.random.normal(lk[0], (D, D), jnp.float32) * 0.05,
            "bq": jnp.zeros((1, D), jnp.float32),
            "wk": jax.random.normal(lk[1], (D, D), jnp.float32) * 0.05,
            "bk": jnp.zeros((1, D), jnp.float32),
            "wv": jax.random.normal(lk[2], (D, D), jnp.float32) * 0.05,
            "bv": jnp.zeros((1, D), jnp.float32),
            "wo": jax.random.normal(lk[3], (D, D), jnp.float32) * 0.05,
            "bo": jnp.zeros((1, D), jnp.float32),
            "g1": jnp.ones((1, D), jnp.float32),
            "beta1": jnp.zeros((1, D), jnp.float32),
            "w1": jax.random.normal(lk[4], (D, F), jnp.float32) * 0.05,
            "bf1": jnp.zeros((1, F), jnp.float32),
            "w2": jax.random.normal(lk[5], (F, D), jnp.float32) * 0.05,
            "bf2": jnp.zeros((1, D), jnp.float32),
            "g2": jnp.ones((1, D), jnp.float32),
            "beta2": jnp.zeros((1, D), jnp.float32),
        })
    params["layers"] = layers
    return params


def prepare_params(params, model_dim, num_heads):
    """One-time weight repack:
       * fold sqrt(model_dim) into the embedding table,
       * fold 1/sqrt(Dh) into Wq AND bq,
       * fuse Wk/Wv into a single [D, 2D] weight (K/V projected together),
       * cast matmul weights to bf16 (biases / LN params stay f32)."""
    assert model_dim % num_heads == 0
    dh = model_dim // num_heads
    emb_scale = float(np.sqrt(np.float32(model_dim)))
    q_scale = 1.0 / float(np.sqrt(np.float32(dh)))
    prepped = {"embedding_scaled": params["embedding"] * emb_scale}
    layers = []
    for lp in params["layers"]:
        layers.append({
            "wq": (lp["wq"] * q_scale).astype(jnp.bfloat16),          # [D, D]
            "bq": lp["bq"] * q_scale,                                  # scaled bias too
            "wkv": jnp.concatenate([lp["wk"], lp["wv"]],
                                   axis=1).astype(jnp.bfloat16),       # [D, 2D]
            "bkv": jnp.concatenate([lp["bk"], lp["bv"]], axis=1),
            "wo": lp["wo"].astype(jnp.bfloat16),
            "bo": lp["bo"],
            "g1": lp["g1"], "beta1": lp["beta1"],
            "w1": lp["w1"].astype(jnp.bfloat16), "bf1": lp["bf1"],
            "w2": lp["w2"].astype(jnp.bfloat16), "bf2": lp["bf2"],
            "g2": lp["g2"], "beta2": lp["beta2"],
        })
    prepped["layers"] = layers
    return prepped


@functools.partial(jax.jit, static_argnames=("num_heads",))
def transformer_encoder(tokens, prepped, pe, num_heads):
    B, S = tokens.shape
    # Embedding gather + positional-encoding add: memory-bound glue left to
    # XLA so it fuses with the gather (sqrt(model_dim) already folded into
    # the table).  Dropout is identity at inference.
    x = jnp.take(prepped["embedding_scaled"], tokens, axis=0) + pe[None, :S, :]
    q_block = _pick_q_block(S)
    vmem_limit = _vmem_limit_bytes()
    for lp in prepped["layers"]:
        x = encoder_layer(x, lp, num_heads, q_block, vmem_limit)   # Pallas kernel
    return x


# ---------------------------------------------------------------------------
if __name__ == "__main__":
    # Small shapes consistent with the module's forward.
    NUM_LAYERS = 2
    MODEL_DIM = 32          # NOTE: lane-dense (multiple-of-128) D is needed for
    NUM_HEADS = 4           # dense vector stores; at D=32 this is just a demo.
    FFN_DIM = 64
    VOCAB = 100
    MAX_SEQ = 16
    B, S = 2, 8

    root = jax.random.PRNGKey(0)
    k_tok, k_param = jax.random.split(root)

    tokens = jax.random.randint(k_tok, (B, S), 0, VOCAB, dtype=jnp.int32)
    params = init_params(k_param, NUM_LAYERS, MODEL_DIM, FFN_DIM, VOCAB)
    prepped = prepare_params(params, MODEL_DIM, NUM_HEADS)
    pe = make_positional_encoding(MAX_SEQ, MODEL_DIM)

    out = transformer_encoder(tokens, prepped, pe, num_heads=NUM_HEADS)
    out = jax.block_until_ready(out)
    assert out.shape == (B, S, MODEL_DIM) and out.dtype == jnp.float32
    assert bool(jnp.all(jnp.isfinite(out)))
    print("KERNEL_OK")
</pallas_src>

<mosaic_0001>
module attributes {stable_mosaic.version = 11 : i64} {
  func.func @_encoder_layer_kernel(%arg0: i32, %arg1: i32, %arg2: memref<1x8x32xf32, #tpu.memory_space<vmem>>, %arg3: memref<1x8x32xf32, #tpu.memory_space<vmem>>, %arg4: memref<32x32xbf16, #tpu.memory_space<vmem>>, %arg5: memref<1x32xf32, #tpu.memory_space<vmem>>, %arg6: memref<32x64xbf16, #tpu.memory_space<vmem>>, %arg7: memref<1x64xf32, #tpu.memory_space<vmem>>, %arg8: memref<32x32xbf16, #tpu.memory_space<vmem>>, %arg9: memref<1x32xf32, #tpu.memory_space<vmem>>, %arg10: memref<1x32xf32, #tpu.memory_space<vmem>>, %arg11: memref<1x32xf32, #tpu.memory_space<vmem>>, %arg12: memref<32x64xbf16, #tpu.memory_space<vmem>>, %arg13: memref<1x64xf32, #tpu.memory_space<vmem>>, %arg14: memref<64x32xbf16, #tpu.memory_space<vmem>>, %arg15: memref<1x32xf32, #tpu.memory_space<vmem>>, %arg16: memref<1x32xf32, #tpu.memory_space<vmem>>, %arg17: memref<1x32xf32, #tpu.memory_space<vmem>>, %arg18: memref<1x8x32xf32, #tpu.memory_space<vmem>>, %arg19: memref<4x8x8xbf16, #tpu.memory_space<vmem>>, %arg20: memref<4x8x8xbf16, #tpu.memory_space<vmem>>) attributes {dimension_semantics = [#tpu.dimension_semantics<parallel>, #tpu.dimension_semantics<arbitrary>], iteration_bounds = array<i64: 2, 1>, scalar_prefetch = 0 : i64, scratch_operands = 2 : i64, tpu.core_type = #tpu.core_type<tc>, window_params = [{transform_indices = @transform_0, window_bounds = array<i64: 1, 8, 32>}, {transform_indices = @transform_1, window_bounds = array<i64: 1, 8, 32>}, {pipeline_mode = #tpu.pipeline_mode<synchronous>, transform_indices = @transform_2, window_bounds = array<i64: 32, 32>}, {pipeline_mode = #tpu.pipeline_mode<synchronous>, transform_indices = @transform_3, window_bounds = array<i64: 1, 32>}, {pipeline_mode = #tpu.pipeline_mode<synchronous>, transform_indices = @transform_4, window_bounds = array<i64: 32, 64>}, {pipeline_mode = #tpu.pipeline_mode<synchronous>, transform_indices = @transform_5, window_bounds = array<i64: 1, 64>}, {pipeline_mode = #tpu.pipeline_mode<synchronous>, transform_indices = @transform_6, window_bounds = array<i64: 32, 32>}, {pipeline_mode = #tpu.pipeline_mode<synchronous>, transform_indices = @transform_7, window_bounds = array<i64: 1, 32>}, {pipeline_mode = #tpu.pipeline_mode<synchronous>, transform_indices = @transform_8, window_bounds = array<i64: 1, 32>}, {pipeline_mode = #tpu.pipeline_mode<synchronous>, transform_indices = @transform_9, window_bounds = array<i64: 1, 32>}, {pipeline_mode = #tpu.pipeline_mode<synchronous>, transform_indices = @transform_10, window_bounds = array<i64: 32, 64>}, {pipeline_mode = #tpu.pipeline_mode<synchronous>, transform_indices = @transform_11, window_bounds = array<i64: 1, 64>}, {pipeline_mode = #tpu.pipeline_mode<synchronous>, transform_indices = @transform_12, window_bounds = array<i64: 64, 32>}, {pipeline_mode = #tpu.pipeline_mode<synchronous>, transform_indices = @transform_13, window_bounds = array<i64: 1, 32>}, {pipeline_mode = #tpu.pipeline_mode<synchronous>, transform_indices = @transform_14, window_bounds = array<i64: 1, 32>}, {pipeline_mode = #tpu.pipeline_mode<synchronous>, transform_indices = @transform_15, window_bounds = array<i64: 1, 32>}, {transform_indices = @transform_16, window_bounds = array<i64: 1, 8, 32>}]} {
    %c0_i32 = arith.constant 0 : i32
    %0 = arith.cmpi eq, %arg1, %c0_i32 : i32
    %1 = arith.extui %0 : i1 to i32
    %c0_i32_0 = arith.constant 0 : i32
    %2 = arith.cmpi ne, %1, %c0_i32_0 : i32
    scf.if %2 {
      %c0_54 = arith.constant 0 : index
      %c0_55 = arith.constant 0 : index
      %c0_56 = arith.constant 0 : index
      %104 = vector.load %arg2[%c0_54, %c0_55, %c0_56] : memref<1x8x32xf32, #tpu.memory_space<vmem>>, vector<1x8x32xf32>
      %105 = vector.shape_cast %104 : vector<1x8x32xf32> to vector<8x32xf32>
      %106 = arith.truncf %105 : vector<8x32xf32> to vector<8x32xbf16>
      %c0_57 = arith.constant 0 : index
      %c0_58 = arith.constant 0 : index
      %107 = vector.load %arg6[%c0_57, %c0_58] : memref<32x64xbf16, #tpu.memory_space<vmem>>, vector<32x64xbf16>
      %cst_59 = arith.constant dense<0.000000e+00> : vector<8x64xf32>
      %108 = tpu.matmul %106, %107, %cst_59 {dimension_numbers = #tpu.dot_dimension_numbers<[1], [0], [0], [1], [0, 0, 1, 1], [], []>} : vector<8x32xbf16>, vector<32x64xbf16>, vector<8x64xf32> -> vector<8x64xf32>
      %c0_60 = arith.constant 0 : index
      %c0_61 = arith.constant 0 : index
      %109 = vector.load %arg7[%c0_60, %c0_61] : memref<1x64xf32, #tpu.memory_space<vmem>>, vector<1x64xf32>
      %110 = vector.broadcast %109 : vector<1x64xf32> to vector<8x64xf32>
      %111 = arith.addf %108, %110 : vector<8x64xf32>
      %112 = vector.extract_strided_slice %111 {offsets = [0, 0], sizes = [8, 32], strides = [1, 1]} : vector<8x64xf32> to vector<8x32xf32>
      %113 = vector.shape_cast %112 : vector<8x32xf32> to vector<8x4x8xf32>
      %114 = tpu.transpose %113, [1, 0, 2] : vector<8x4x8xf32> -> vector<4x8x8xf32>
      %115 = arith.truncf %114 : vector<4x8x8xf32> to vector<4x8x8xbf16>
      %c0_62 = arith.constant 0 : index
      %c0_63 = arith.constant 0 : index
      %c0_64 = arith.constant 0 : index
      %116 = vector.load %arg19[%c0_62, %c0_63, %c0_64] : memref<4x8x8xbf16, #tpu.memory_space<vmem>>, vector<4x8x8xbf16>
      tpu.vector_store %arg19[%c0_62, %c0_63, %c0_64], %115 {strides = array<i32>} : memref<4x8x8xbf16, #tpu.memory_space<vmem>>, vector<4x8x8xbf16>,
      %117 = vector.extract_strided_slice %111 {offsets = [0, 32], sizes = [8, 32], strides = [1, 1]} : vector<8x64xf32> to vector<8x32xf32>
      %118 = vector.shape_cast %117 : vector<8x32xf32> to vector<8x4x8xf32>
      %119 = tpu.transpose %118, [1, 0, 2] : vector<8x4x8xf32> -> vector<4x8x8xf32>
      %120 = arith.truncf %119 : vector<4x8x8xf32> to vector<4x8x8xbf16>
      %c0_65 = arith.constant 0 : index
      %c0_66 = arith.constant 0 : index
      %c0_67 = arith.constant 0 : index
      %121 = vector.load %arg20[%c0_65, %c0_66, %c0_67] : memref<4x8x8xbf16, #tpu.memory_space<vmem>>, vector<4x8x8xbf16>
      tpu.vector_store %arg20[%c0_65, %c0_66, %c0_67], %120 {strides = array<i32>} : memref<4x8x8xbf16, #tpu.memory_space<vmem>>, vector<4x8x8xbf16>,
    } else {
    }
    %c0 = arith.constant 0 : index
    %c0_1 = arith.constant 0 : index
    %c0_2 = arith.constant 0 : index
    %3 = vector.load %arg3[%c0, %c0_1, %c0_2] : memref<1x8x32xf32, #tpu.memory_space<vmem>>, vector<1x8x32xf32>
    %4 = vector.shape_cast %3 : vector<1x8x32xf32> to vector<8x32xf32>
    %5 = arith.truncf %4 : vector<8x32xf32> to vector<8x32xbf16>
    %c0_3 = arith.constant 0 : index
    %c0_4 = arith.constant 0 : index
    %6 = vector.load %arg4[%c0_3, %c0_4] : memref<32x32xbf16, #tpu.memory_space<vmem>>, vector<32x32xbf16>
    %cst = arith.constant dense<0.000000e+00> : vector<8x32xf32>
    %7 = tpu.matmul %5, %6, %cst {dimension_numbers = #tpu.dot_dimension_numbers<[1], [0], [0], [1], [0, 0, 1, 1], [], []>} : vector<8x32xbf16>, vector<32x32xbf16>, vector<8x32xf32> -> vector<8x32xf32>
    %c0_5 = arith.constant 0 : index
    %c0_6 = arith.constant 0 : index
    %8 = vector.load %arg5[%c0_5, %c0_6] : memref<1x32xf32, #tpu.memory_space<vmem>>, vector<1x32xf32>
    %9 = vector.broadcast %8 : vector<1x32xf32> to vector<8x32xf32>
    %10 = arith.addf %7, %9 : vector<8x32xf32>
    %11 = vector.shape_cast %10 : vector<8x32xf32> to vector<8x4x8xf32>
    %12 = tpu.transpose %11, [1, 0, 2] : vector<8x4x8xf32> -> vector<4x8x8xf32>
    %13 = arith.truncf %12 : vector<4x8x8xf32> to vector<4x8x8xbf16>
    %c0_7 = arith.constant 0 : index
    %c0_8 = arith.constant 0 : index
    %c0_9 = arith.constant 0 : index
    %14 = vector.load %arg19[%c0_7, %c0_8, %c0_9] : memref<4x8x8xbf16, #tpu.memory_space<vmem>>, vector<4x8x8xbf16>
    "tpu.trace_start"() <{level = 10 : i32, message = "hqd,hkd->hqk"}> : () -> ()
    %cst_10 = arith.constant dense<0.000000e+00> : vector<4x8x8xf32>
    %15 = tpu.matmul %13, %14, %cst_10 {dimension_numbers = #tpu.dot_dimension_numbers<[2], [2], [1], [1], [0, 0, 0, 1, 1, 1], [0], [0]>} : vector<4x8x8xbf16>, vector<4x8x8xbf16>, vector<4x8x8xf32> -> vector<4x8x8xf32>
    "tpu.trace_stop"() : () -> ()
    %cst_11 = arith.constant dense<0xFF800000> : vector<4x8xf32>
    %16 = vector.multi_reduction <maximumf>, %15, %cst_11 [2] : vector<4x8x8xf32> to vector<4x8xf32>
    %17 = vector.shape_cast %16 : vector<4x8xf32> to vector<4x8x1xf32>
    %18 = vector.broadcast %17 : vector<4x8x1xf32> to vector<4x8x8xf32>
    %19 = arith.subf %15, %18 : vector<4x8x8xf32>
    %20 = math.exp %19 : vector<4x8x8xf32>
    %cst_12 = arith.constant dense<0.000000e+00> : vector<4x8xf32>
    %21 = vector.multi_reduction <add>, %20, %cst_12 [2] : vector<4x8x8xf32> to vector<4x8xf32>
    %22 = vector.shape_cast %21 : vector<4x8xf32> to vector<4x8x1xf32>
    %23 = arith.truncf %20 : vector<4x8x8xf32> to vector<4x8x8xbf16>
    %c0_13 = arith.constant 0 : index
    %c0_14 = arith.constant 0 : index
    %c0_15 = arith.constant 0 : index
    %24 = vector.load %arg20[%c0_13, %c0_14, %c0_15] : memref<4x8x8xbf16, #tpu.memory_space<vmem>>, vector<4x8x8xbf16>
    "tpu.trace_start"() <{level = 10 : i32, message = "hqk,hkd->hqd"}> : () -> ()
    %cst_16 = arith.constant dense<0.000000e+00> : vector<4x8x8xf32>
    %25 = tpu.matmul %23, %24, %cst_16 {dimension_numbers = #tpu.dot_dimension_numbers<[2], [1], [1], [2], [0, 0, 0, 1, 1, 2], [0], [0]>} : vector<4x8x8xbf16>, vector<4x8x8xbf16>, vector<4x8x8xf32> -> vector<4x8x8xf32>
    "tpu.trace_stop"() : () -> ()
    %26 = tpu.reciprocal %22 {approx = true} : vector<4x8x1xf32> -> vector<4x8x1xf32>
    %27 = vector.broadcast %26 : vector<4x8x1xf32> to vector<4x8x8xf32>
    %28 = arith.mulf %25, %27 : vector<4x8x8xf32>
    %29 = tpu.transpose %28, [1, 0, 2] : vector<4x8x8xf32> -> vector<8x4x8xf32>
    %30 = vector.shape_cast %29 : vector<8x4x8xf32> to vector<8x32xf32>
    %31 = arith.truncf %30 : vector<8x32xf32> to vector<8x32xbf16>
    %c0_17 = arith.constant 0 : index
    %c0_18 = arith.constant 0 : index
    %32 = vector.load %arg8[%c0_17, %c0_18] : memref<32x32xbf16, #tpu.memory_space<vmem>>, vector<32x32xbf16>
    %cst_19 = arith.constant dense<0.000000e+00> : vector<8x32xf32>
    %33 = tpu.matmul %31, %32, %cst_19 {dimension_numbers = #tpu.dot_dimension_numbers<[1], [0], [0], [1], [0, 0, 1, 1], [], []>} : vector<8x32xbf16>, vector<32x32xbf16>, vector<8x32xf32> -> vector<8x32xf32>
    %c0_20 = arith.constant 0 : index
    %c0_21 = arith.constant 0 : index
    %34 = vector.load %arg9[%c0_20, %c0_21] : memref<1x32xf32, #tpu.memory_space<vmem>>, vector<1x32xf32>
    %35 = vector.broadcast %34 : vector<1x32xf32> to vector<8x32xf32>
    %36 = arith.addf %33, %35 : vector<8x32xf32>
    %37 = arith.addf %4, %36 : vector<8x32xf32>
    %cst_22 = arith.constant dense<0.000000e+00> : vector<8xf32>
    %38 = vector.multi_reduction <add>, %37, %cst_22 [1] : vector<8x32xf32> to vector<8xf32>
    %39 = vector.shape_cast %38 : vector<8xf32> to vector<8x1xf32>
    %cst_23 = arith.constant 3.200000e+01 : f32
    %40 = vector.broadcast %cst_23 : f32 to vector<8x1xf32>
    %41 = arith.divf %39, %40 : vector<8x1xf32>
    %42 = vector.broadcast %41 : vector<8x1xf32> to vector<8x32xf32>
    %43 = arith.subf %37, %42 : vector<8x32xf32>
    %44 = arith.mulf %43, %43 : vector<8x32xf32>
    %cst_24 = arith.constant dense<0.000000e+00> : vector<8xf32>
    %45 = vector.multi_reduction <add>, %44, %cst_24 [1] : vector<8x32xf32> to vector<8xf32>
    %46 = vector.shape_cast %45 : vector<8xf32> to vector<8x1xf32>
    %cst_25 = arith.constant 3.200000e+01 : f32
    %47 = vector.broadcast %cst_25 : f32 to vector<8x1xf32>
    %48 = arith.divf %46, %47 : vector<8x1xf32>
    %49 = vector.broadcast %41 : vector<8x1xf32> to vector<8x32xf32>
    %50 = arith.subf %37, %49 : vector<8x32xf32>
    %cst_26 = arith.constant 9.99999974E-6 : f32
    %51 = vector.broadcast %cst_26 : f32 to vector<8x1xf32>
    %52 = arith.addf %48, %51 : vector<8x1xf32>
    %53 = math.rsqrt %52 : vector<8x1xf32>
    %54 = vector.broadcast %53 : vector<8x1xf32> to vector<8x32xf32>
    %55 = arith.mulf %50, %54 : vector<8x32xf32>
    %c0_27 = arith.constant 0 : index
    %c0_28 = arith.constant 0 : index
    %56 = vector.load %arg10[%c0_27, %c0_28] : memref<1x32xf32, #tpu.memory_space<vmem>>, vector<1x32xf32>
    %57 = vector.broadcast %56 : vector<1x32xf32> to vector<8x32xf32>
    %58 = arith.mulf %55, %57 : vector<8x32xf32>
    %c0_29 = arith.constant 0 : index
    %c0_30 = arith.constant 0 : index
    %59 = vector.load %arg11[%c0_29, %c0_30] : memref<1x32xf32, #tpu.memory_space<vmem>>, vector<1x32xf32>
    %60 = vector.broadcast %59 : vector<1x32xf32> to vector<8x32xf32>
    %61 = arith.addf %58, %60 : vector<8x32xf32>
    %62 = arith.truncf %61 : vector<8x32xf32> to vector<8x32xbf16>
    %c0_31 = arith.constant 0 : index
    %c0_32 = arith.constant 0 : index
    %63 = vector.load %arg12[%c0_31, %c0_32] : memref<32x64xbf16, #tpu.memory_space<vmem>>, vector<32x64xbf16>
    %cst_33 = arith.constant dense<0.000000e+00> : vector<8x64xf32>
    %64 = tpu.matmul %62, %63, %cst_33 {dimension_numbers = #tpu.dot_dimension_numbers<[1], [0], [0], [1], [0, 0, 1, 1], [], []>} : vector<8x32xbf16>, vector<32x64xbf16>, vector<8x64xf32> -> vector<8x64xf32>
    %c0_34 = arith.constant 0 : index
    %c0_35 = arith.constant 0 : index
    %65 = vector.load %arg13[%c0_34, %c0_35] : memref<1x64xf32, #tpu.memory_space<vmem>>, vector<1x64xf32>
    %66 = vector.broadcast %65 : vector<1x64xf32> to vector<8x64xf32>
    %67 = arith.addf %64, %66 : vector<8x64xf32>
    %cst_36 = arith.constant 0.000000e+00 : f32
    %68 = vector.broadcast %cst_36 : f32 to vector<8x64xf32>
    %69 = arith.maximumf %67, %68 : vector<8x64xf32>
    %70 = arith.truncf %69 : vector<8x64xf32> to vector<8x64xbf16>
    %c0_37 = arith.constant 0 : index
    %c0_38 = arith.constant 0 : index
    %71 = vector.load %arg14[%c0_37, %c0_38] : memref<64x32xbf16, #tpu.memory_space<vmem>>, vector<64x32xbf16>
    %cst_39 = arith.constant dense<0.000000e+00> : vector<8x32xf32>
    %72 = tpu.matmul %70, %71, %cst_39 {dimension_numbers = #tpu.dot_dimension_numbers<[1], [0], [0], [1], [0, 0, 1, 1], [], []>} : vector<8x64xbf16>, vector<64x32xbf16>, vector<8x32xf32> -> vector<8x32xf32>
    %c0_40 = arith.constant 0 : index
    %c0_41 = arith.constant 0 : index
    %73 = vector.load %arg15[%c0_40, %c0_41] : memref<1x32xf32, #tpu.memory_space<vmem>>, vector<1x32xf32>
    %74 = vector.broadcast %73 : vector<1x32xf32> to vector<8x32xf32>
    %75 = arith.addf %72, %74 : vector<8x32xf32>
    %76 = arith.addf %61, %75 : vector<8x32xf32>
    %cst_42 = arith.constant dense<0.000000e+00> : vector<8xf32>
    %77 = vector.multi_reduction <add>, %76, %cst_42 [1] : vector<8x32xf32> to vector<8xf32>
    %78 = vector.shape_cast %77 : vector<8xf32> to vector<8x1xf32>
    %cst_43 = arith.constant 3.200000e+01 : f32
    %79 = vector.broadcast %cst_43 : f32 to vector<8x1xf32>
    %80 = arith.divf %78, %79 : vector<8x1xf32>
    %81 = vector.broadcast %80 : vector<8x1xf32> to vector<8x32xf32>
    %82 = arith.subf %76, %81 : vector<8x32xf32>
    %83 = arith.mulf %82, %82 : vector<8x32xf32>
    %cst_44 = arith.constant dense<0.000000e+00> : vector<8xf32>
    %84 = vector.multi_reduction <add>, %83, %cst_44 [1] : vector<8x32xf32> to vector<8xf32>
    %85 = vector.shape_cast %84 : vector<8xf32> to vector<8x1xf32>
    %cst_45 = arith.constant 3.200000e+01 : f32
    %86 = vector.broadcast %cst_45 : f32 to vector<8x1xf32>
    %87 = arith.divf %85, %86 : vector<8x1xf32>
    %88 = vector.broadcast %80 : vector<8x1xf32> to vector<8x32xf32>
    %89 = arith.subf %76, %88 : vector<8x32xf32>
    %cst_46 = arith.constant 9.99999974E-6 : f32
    %90 = vector.broadcast %cst_46 : f32 to vector<8x1xf32>
    %91 = arith.addf %87, %90 : vector<8x1xf32>
    %92 = math.rsqrt %91 : vector<8x1xf32>
    %93 = vector.broadcast %92 : vector<8x1xf32> to vector<8x32xf32>
    %94 = arith.mulf %89, %93 : vector<8x32xf32>
    %c0_47 = arith.constant 0 : index
    %c0_48 = arith.constant 0 : index
    %95 = vector.load %arg16[%c0_47, %c0_48] : memref<1x32xf32, #tpu.memory_space<vmem>>, vector<1x32xf32>
    %96 = vector.broadcast %95 : vector<1x32xf32> to vector<8x32xf32>
    %97 = arith.mulf %94, %96 : vector<8x32xf32>
    %c0_49 = arith.constant 0 : index
    %c0_50 = arith.constant 0 : index
    %98 = vector.load %arg17[%c0_49, %c0_50] : memref<1x32xf32, #tpu.memory_space<vmem>>, vector<1x32xf32>
    %99 = vector.broadcast %98 : vector<1x32xf32> to vector<8x32xf32>
    %100 = arith.addf %97, %99 : vector<8x32xf32>
    %c0_51 = arith.constant 0 : index
    %c0_52 = arith.constant 0 : index
    %c0_53 = arith.constant 0 : index
    %101 = vector.load %arg18[%c0_51, %c0_52, %c0_53] : memref<1x8x32xf32, #tpu.memory_space<vmem>>, vector<1x8x32xf32>
    %102 = vector.shape_cast %101 : vector<1x8x32xf32> to vector<8x32xf32>
    %103 = vector.shape_cast %100 : vector<8x32xf32> to vector<1x8x32xf32>
    tpu.vector_store %arg18[%c0_51, %c0_52, %c0_53], %103 {strides = array<i32>} : memref<1x8x32xf32, #tpu.memory_space<vmem>>, vector<1x8x32xf32>,
    return
  }
  func.func @transform_0(%arg0: i32, %arg1: i32) -> (i32, i32, i32) {
    %c0_i32 = arith.constant 0 : i32
    %c0_i32_0 = arith.constant 0 : i32
    %c0_i32_1 = arith.constant 0 : i32
    return %arg0, %c0_i32, %c0_i32_0 : i32, i32, i32
  }
  func.func @transform_1(%arg0: i32, %arg1: i32) -> (i32, i32, i32) {
    %c0_i32 = arith.constant 0 : i32
    %c0_i32_0 = arith.constant 0 : i32
    return %arg0, %arg1, %c0_i32 : i32, i32, i32
  }
  func.func @transform_2(%arg0: i32, %arg1: i32) -> (i32, i32) {
    %c0_i32 = arith.constant 0 : i32
    %c0_i32_0 = arith.constant 0 : i32
    %c0_i32_1 = arith.constant 0 : i32
    return %c0_i32, %c0_i32_0 : i32, i32
  }
  func.func @transform_3(%arg0: i32, %arg1: i32) -> (i32, i32) {
    %c0_i32 = arith.constant 0 : i32
    %c0_i32_0 = arith.constant 0 : i32
    %c0_i32_1 = arith.constant 0 : i32
    return %c0_i32, %c0_i32_0 : i32, i32
  }
  func.func @transform_4(%arg0: i32, %arg1: i32) -> (i32, i32) {
    %c0_i32 = arith.constant 0 : i32
    %c0_i32_0 = arith.constant 0 : i32
    %c0_i32_1 = arith.constant 0 : i32
    return %c0_i32, %c0_i32_0 : i32, i32
  }
  func.func @transform_5(%arg0: i32, %arg1: i32) -> (i32, i32) {
    %c0_i32 = arith.constant 0 : i32
    %c0_i32_0 = arith.constant 0 : i32
    %c0_i32_1 = arith.constant 0 : i32
    return %c0_i32, %c0_i32_0 : i32, i32
  }
  func.func @transform_6(%arg0: i32, %arg1: i32) -> (i32, i32) {
    %c0_i32 = arith.constant 0 : i32
    %c0_i32_0 = arith.constant 0 : i32
    %c0_i32_1 = arith.constant 0 : i32
    return %c0_i32, %c0_i32_0 : i32, i32
  }
  func.func @transform_7(%arg0: i32, %arg1: i32) -> (i32, i32) {
    %c0_i32 = arith.constant 0 : i32
    %c0_i32_0 = arith.constant 0 : i32
    %c0_i32_1 = arith.constant 0 : i32
    return %c0_i32, %c0_i32_0 : i32, i32
  }
  func.func @transform_8(%arg0: i32, %arg1: i32) -> (i32, i32) {
    %c0_i32 = arith.constant 0 : i32
    %c0_i32_0 = arith.constant 0 : i32
    %c0_i32_1 = arith.constant 0 : i32
    return %c0_i32, %c0_i32_0 : i32, i32
  }
  func.func @transform_9(%arg0: i32, %arg1: i32) -> (i32, i32) {
    %c0_i32 = arith.constant 0 : i32
    %c0_i32_0 = arith.constant 0 : i32
    %c0_i32_1 = arith.constant 0 : i32
    return %c0_i32, %c0_i32_0 : i32, i32
  }
  func.func @transform_10(%arg0: i32, %arg1: i32) -> (i32, i32) {
    %c0_i32 = arith.constant 0 : i32
    %c0_i32_0 = arith.constant 0 : i32
    %c0_i32_1 = arith.constant 0 : i32
    return %c0_i32, %c0_i32_0 : i32, i32
  }
  func.func @transform_11(%arg0: i32, %arg1: i32) -> (i32, i32) {
    %c0_i32 = arith.constant 0 : i32
    %c0_i32_0 = arith.constant 0 : i32
    %c0_i32_1 = arith.constant 0 : i32
    return %c0_i32, %c0_i32_0 : i32, i32
  }
  func.func @transform_12(%arg0: i32, %arg1: i32) -> (i32, i32) {
    %c0_i32 = arith.constant 0 : i32
    %c0_i32_0 = arith.constant 0 : i32
    %c0_i32_1 = arith.constant 0 : i32
    return %c0_i32, %c0_i32_0 : i32, i32
  }
  func.func @transform_13(%arg0: i32, %arg1: i32) -> (i32, i32) {
    %c0_i32 = arith.constant 0 : i32
    %c0_i32_0 = arith.constant 0 : i32
    %c0_i32_1 = arith.constant 0 : i32
    return %c0_i32, %c0_i32_0 : i32, i32
  }
  func.func @transform_14(%arg0: i32, %arg1: i32) -> (i32, i32) {
    %c0_i32 = arith.constant 0 : i32
    %c0_i32_0 = arith.constant 0 : i32
    %c0_i32_1 = arith.constant 0 : i32
    return %c0_i32, %c0_i32_0 : i32, i32
  }
  func.func @transform_15(%arg0: i32, %arg1: i32) -> (i32, i32) {
    %c0_i32 = arith.constant 0 : i32
    %c0_i32_0 = arith.constant 0 : i32
    %c0_i32_1 = arith.constant 0 : i32
    return %c0_i32, %c0_i32_0 : i32, i32
  }
  func.func @transform_16(%arg0: i32, %arg1: i32) -> (i32, i32, i32) {
    %c0_i32 = arith.constant 0 : i32
    %c0_i32_0 = arith.constant 0 : i32
    return %arg0, %arg1, %c0_i32 : i32, i32, i32
  }
}

module attributes {stable_mosaic.version = 11 : i64} {
  func.func @_encoder_layer_kernel(%arg0: i32, %arg1: i32, %arg2: memref<1x8x32xf32, #tpu.memory_space<vmem>>, %arg3: memref<1x8x32xf32, #tpu.memory_space<vmem>>, %arg4: memref<32x32xbf16, #tpu.memory_space<vmem>>, %arg5: memref<1x32xf32, #tpu.memory_space<vmem>>, %arg6: memref<32x64xbf16, #tpu.memory_space<vmem>>, %arg7: memref<1x64xf32, #tpu.memory_space<vmem>>, %arg8: memref<32x32xbf16, #tpu.memory_space<vmem>>, %arg9: memref<1x32xf32, #tpu.memory_space<vmem>>, %arg10: memref<1x32xf32, #tpu.memory_space<vmem>>, %arg11: memref<1x32xf32, #tpu.memory_space<vmem>>, %arg12: memref<32x64xbf16, #tpu.memory_space<vmem>>, %arg13: memref<1x64xf32, #tpu.memory_space<vmem>>, %arg14: memref<64x32xbf16, #tpu.memory_space<vmem>>, %arg15: memref<1x32xf32, #tpu.memory_space<vmem>>, %arg16: memref<1x32xf32, #tpu.memory_space<vmem>>, %arg17: memref<1x32xf32, #tpu.memory_space<vmem>>, %arg18: memref<1x8x32xf32, #tpu.memory_space<vmem>>, %arg19: memref<4x8x8xbf16, #tpu.memory_space<vmem>>, %arg20: memref<4x8x8xbf16, #tpu.memory_space<vmem>>) attributes {dimension_semantics = [#tpu.dimension_semantics<parallel>, #tpu.dimension_semantics<arbitrary>], iteration_bounds = array<i64: 2, 1>, scalar_prefetch = 0 : i64, scratch_operands = 2 : i64, tpu.core_type = #tpu.core_type<tc>, window_params = [{transform_indices = @transform_0, window_bounds = array<i64: 1, 8, 32>}, {transform_indices = @transform_1, window_bounds = array<i64: 1, 8, 32>}, {pipeline_mode = #tpu.pipeline_mode<synchronous>, transform_indices = @transform_2, window_bounds = array<i64: 32, 32>}, {pipeline_mode = #tpu.pipeline_mode<synchronous>, transform_indices = @transform_3, window_bounds = array<i64: 1, 32>}, {pipeline_mode = #tpu.pipeline_mode<synchronous>, transform_indices = @transform_4, window_bounds = array<i64: 32, 64>}, {pipeline_mode = #tpu.pipeline_mode<synchronous>, transform_indices = @transform_5, window_bounds = array<i64: 1, 64>}, {pipeline_mode = #tpu.pipeline_mode<synchronous>, transform_indices = @transform_6, window_bounds = array<i64: 32, 32>}, {pipeline_mode = #tpu.pipeline_mode<synchronous>, transform_indices = @transform_7, window_bounds = array<i64: 1, 32>}, {pipeline_mode = #tpu.pipeline_mode<synchronous>, transform_indices = @transform_8, window_bounds = array<i64: 1, 32>}, {pipeline_mode = #tpu.pipeline_mode<synchronous>, transform_indices = @transform_9, window_bounds = array<i64: 1, 32>}, {pipeline_mode = #tpu.pipeline_mode<synchronous>, transform_indices = @transform_10, window_bounds = array<i64: 32, 64>}, {pipeline_mode = #tpu.pipeline_mode<synchronous>, transform_indices = @transform_11, window_bounds = array<i64: 1, 64>}, {pipeline_mode = #tpu.pipeline_mode<synchronous>, transform_indices = @transform_12, window_bounds = array<i64: 64, 32>}, {pipeline_mode = #tpu.pipeline_mode<synchronous>, transform_indices = @transform_13, window_bounds = array<i64: 1, 32>}, {pipeline_mode = #tpu.pipeline_mode<synchronous>, transform_indices = @transform_14, window_bounds = array<i64: 1, 32>}, {pipeline_mode = #tpu.pipeline_mode<synchronous>, transform_indices = @transform_15, window_bounds = array<i64: 1, 32>}, {transform_indices = @transform_16, window_bounds = array<i64: 1, 8, 32>}]} {
    %c0_i32 = arith.constant 0 : i32
    %0 = arith.cmpi eq, %arg1, %c0_i32 : i32
    %1 = arith.extui %0 : i1 to i32
    %c0_i32_0 = arith.constant 0 : i32
    %2 = arith.cmpi ne, %1, %c0_i32_0 : i32
    scf.if %2 {
      %c0_54 = arith.constant 0 : index
      %c0_55 = arith.constant 0 : index
      %c0_56 = arith.constant 0 : index
      %104 = vector.load %arg2[%c0_54, %c0_55, %c0_56] : memref<1x8x32xf32, #tpu.memory_space<vmem>>, vector<1x8x32xf32>
      %105 = vector.shape_cast %104 : vector<1x8x32xf32> to vector<8x32xf32>
      %106 = arith.truncf %105 : vector<8x32xf32> to vector<8x32xbf16>
      %c0_57 = arith.constant 0 : index
      %c0_58 = arith.constant 0 : index
      %107 = vector.load %arg6[%c0_57, %c0_58] : memref<32x64xbf16, #tpu.memory_space<vmem>>, vector<32x64xbf16>
      %cst_59 = arith.constant dense<0.000000e+00> : vector<8x64xf32>
      %108 = tpu.matmul %106, %107, %cst_59 {dimension_numbers = #tpu.dot_dimension_numbers<[1], [0], [0], [1], [0, 0, 1, 1], [], []>} : vector<8x32xbf16>, vector<32x64xbf16>, vector<8x64xf32> -> vector<8x64xf32>
      %c0_60 = arith.constant 0 : index
      %c0_61 = arith.constant 0 : index
      %109 = vector.load %arg7[%c0_60, %c0_61] : memref<1x64xf32, #tpu.memory_space<vmem>>, vector<1x64xf32>
      %110 = vector.broadcast %109 : vector<1x64xf32> to vector<8x64xf32>
      %111 = arith.addf %108, %110 : vector<8x64xf32>
      %112 = vector.extract_strided_slice %111 {offsets = [0, 0], sizes = [8, 32], strides = [1, 1]} : vector<8x64xf32> to vector<8x32xf32>
      %113 = vector.shape_cast %112 : vector<8x32xf32> to vector<8x4x8xf32>
      %114 = tpu.transpose %113, [1, 0, 2] : vector<8x4x8xf32> -> vector<4x8x8xf32>
      %115 = arith.truncf %114 : vector<4x8x8xf32> to vector<4x8x8xbf16>
      %c0_62 = arith.constant 0 : index
      %c0_63 = arith.constant 0 : index
      %c0_64 = arith.constant 0 : index
      %116 = vector.load %arg19[%c0_62, %c0_63, %c0_64] : memref<4x8x8xbf16, #tpu.memory_space<vmem>>, vector<4x8x8xbf16>
      tpu.vector_store %arg19[%c0_62, %c0_63, %c0_64], %115 {strides = array<i32>} : memref<4x8x8xbf16, #tpu.memory_space<vmem>>, vector<4x8x8xbf16>,
      %117 = vector.extract_strided_slice %111 {offsets = [0, 32], sizes = [8, 32], strides = [1, 1]} : vector<8x64xf32> to vector<8x32xf32>
      %118 = vector.shape_cast %117 : vector<8x32xf32> to vector<8x4x8xf32>
      %119 = tpu.transpose %118, [1, 0, 2] : vector<8x4x8xf32> -> vector<4x8x8xf32>
      %120 = arith.truncf %119 : vector<4x8x8xf32> to vector<4x8x8xbf16>
      %c0_65 = arith.constant 0 : index
      %c0_66 = arith.constant 0 : index
      %c0_67 = arith.constant 0 : index
      %121 = vector.load %arg20[%c0_65, %c0_66, %c0_67] : memref<4x8x8xbf16, #tpu.memory_space<vmem>>, vector<4x8x8xbf16>
      tpu.vector_store %arg20[%c0_65, %c0_66, %c0_67], %120 {strides = array<i32>} : memref<4x8x8xbf16, #tpu.memory_space<vmem>>, vector<4x8x8xbf16>,
    } else {
    }
    %c0 = arith.constant 0 : index
    %c0_1 = arith.constant 0 : index
    %c0_2 = arith.constant 0 : index
    %3 = vector.load %arg3[%c0, %c0_1, %c0_2] : memref<1x8x32xf32, #tpu.memory_space<vmem>>, vector<1x8x32xf32>
    %4 = vector.shape_cast %3 : vector<1x8x32xf32> to vector<8x32xf32>
    %5 = arith.truncf %4 : vector<8x32xf32> to vector<8x32xbf16>
    %c0_3 = arith.constant 0 : index
    %c0_4 = arith.constant 0 : index
    %6 = vector.load %arg4[%c0_3, %c0_4] : memref<32x32xbf16, #tpu.memory_space<vmem>>, vector<32x32xbf16>
    %cst = arith.constant dense<0.000000e+00> : vector<8x32xf32>
    %7 = tpu.matmul %5, %6, %cst {dimension_numbers = #tpu.dot_dimension_numbers<[1], [0], [0], [1], [0, 0, 1, 1], [], []>} : vector<8x32xbf16>, vector<32x32xbf16>, vector<8x32xf32> -> vector<8x32xf32>
    %c0_5 = arith.constant 0 : index
    %c0_6 = arith.constant 0 : index
    %8 = vector.load %arg5[%c0_5, %c0_6] : memref<1x32xf32, #tpu.memory_space<vmem>>, vector<1x32xf32>
    %9 = vector.broadcast %8 : vector<1x32xf32> to vector<8x32xf32>
    %10 = arith.addf %7, %9 : vector<8x32xf32>
    %11 = vector.shape_cast %10 : vector<8x32xf32> to vector<8x4x8xf32>
    %12 = tpu.transpose %11, [1, 0, 2] : vector<8x4x8xf32> -> vector<4x8x8xf32>
    %13 = arith.truncf %12 : vector<4x8x8xf32> to vector<4x8x8xbf16>
    %c0_7 = arith.constant 0 : index
    %c0_8 = arith.constant 0 : index
    %c0_9 = arith.constant 0 : index
    %14 = vector.load %arg19[%c0_7, %c0_8, %c0_9] : memref<4x8x8xbf16, #tpu.memory_space<vmem>>, vector<4x8x8xbf16>
    "tpu.trace_start"() <{level = 10 : i32, message = "hqd,hkd->hqk"}> : () -> ()
    %cst_10 = arith.constant dense<0.000000e+00> : vector<4x8x8xf32>
    %15 = tpu.matmul %13, %14, %cst_10 {dimension_numbers = #tpu.dot_dimension_numbers<[2], [2], [1], [1], [0, 0, 0, 1, 1, 1], [0], [0]>} : vector<4x8x8xbf16>, vector<4x8x8xbf16>, vector<4x8x8xf32> -> vector<4x8x8xf32>
    "tpu.trace_stop"() : () -> ()
    %cst_11 = arith.constant dense<0xFF800000> : vector<4x8xf32>
    %16 = vector.multi_reduction <maximumf>, %15, %cst_11 [2] : vector<4x8x8xf32> to vector<4x8xf32>
    %17 = vector.shape_cast %16 : vector<4x8xf32> to vector<4x8x1xf32>
    %18 = vector.broadcast %17 : vector<4x8x1xf32> to vector<4x8x8xf32>
    %19 = arith.subf %15, %18 : vector<4x8x8xf32>
    %20 = math.exp %19 : vector<4x8x8xf32>
    %cst_12 = arith.constant dense<0.000000e+00> : vector<4x8xf32>
    %21 = vector.multi_reduction <add>, %20, %cst_12 [2] : vector<4x8x8xf32> to vector<4x8xf32>
    %22 = vector.shape_cast %21 : vector<4x8xf32> to vector<4x8x1xf32>
    %23 = arith.truncf %20 : vector<4x8x8xf32> to vector<4x8x8xbf16>
    %c0_13 = arith.constant 0 : index
    %c0_14 = arith.constant 0 : index
    %c0_15 = arith.constant 0 : index
    %24 = vector.load %arg20[%c0_13, %c0_14, %c0_15] : memref<4x8x8xbf16, #tpu.memory_space<vmem>>, vector<4x8x8xbf16>
    "tpu.trace_start"() <{level = 10 : i32, message = "hqk,hkd->hqd"}> : () -> ()
    %cst_16 = arith.constant dense<0.000000e+00> : vector<4x8x8xf32>
    %25 = tpu.matmul %23, %24, %cst_16 {dimension_numbers = #tpu.dot_dimension_numbers<[2], [1], [1], [2], [0, 0, 0, 1, 1, 2], [0], [0]>} : vector<4x8x8xbf16>, vector<4x8x8xbf16>, vector<4x8x8xf32> -> vector<4x8x8xf32>
    "tpu.trace_stop"() : () -> ()
    %26 = tpu.reciprocal %22 {approx = true} : vector<4x8x1xf32> -> vector<4x8x1xf32>
    %27 = vector.broadcast %26 : vector<4x8x1xf32> to vector<4x8x8xf32>
    %28 = arith.mulf %25, %27 : vector<4x8x8xf32>
    %29 = tpu.transpose %28, [1, 0, 2] : vector<4x8x8xf32> -> vector<8x4x8xf32>
    %30 = vector.shape_cast %29 : vector<8x4x8xf32> to vector<8x32xf32>
    %31 = arith.truncf %30 : vector<8x32xf32> to vector<8x32xbf16>
    %c0_17 = arith.constant 0 : index
    %c0_18 = arith.constant 0 : index
    %32 = vector.load %arg8[%c0_17, %c0_18] : memref<32x32xbf16, #tpu.memory_space<vmem>>, vector<32x32xbf16>
    %cst_19 = arith.constant dense<0.000000e+00> : vector<8x32xf32>
    %33 = tpu.matmul %31, %32, %cst_19 {dimension_numbers = #tpu.dot_dimension_numbers<[1], [0], [0], [1], [0, 0, 1, 1], [], []>} : vector<8x32xbf16>, vector<32x32xbf16>, vector<8x32xf32> -> vector<8x32xf32>
    %c0_20 = arith.constant 0 : index
    %c0_21 = arith.constant 0 : index
    %34 = vector.load %arg9[%c0_20, %c0_21] : memref<1x32xf32, #tpu.memory_space<vmem>>, vector<1x32xf32>
    %35 = vector.broadcast %34 : vector<1x32xf32> to vector<8x32xf32>
    %36 = arith.addf %33, %35 : vector<8x32xf32>
    %37 = arith.addf %4, %36 : vector<8x32xf32>
    %cst_22 = arith.constant dense<0.000000e+00> : vector<8xf32>
    %38 = vector.multi_reduction <add>, %37, %cst_22 [1] : vector<8x32xf32> to vector<8xf32>
    %39 = vector.shape_cast %38 : vector<8xf32> to vector<8x1xf32>
    %cst_23 = arith.constant 3.200000e+01 : f32
    %40 = vector.broadcast %cst_23 : f32 to vector<8x1xf32>
    %41 = arith.divf %39, %40 : vector<8x1xf32>
    %42 = vector.broadcast %41 : vector<8x1xf32> to vector<8x32xf32>
    %43 = arith.subf %37, %42 : vector<8x32xf32>
    %44 = arith.mulf %43, %43 : vector<8x32xf32>
    %cst_24 = arith.constant dense<0.000000e+00> : vector<8xf32>
    %45 = vector.multi_reduction <add>, %44, %cst_24 [1] : vector<8x32xf32> to vector<8xf32>
    %46 = vector.shape_cast %45 : vector<8xf32> to vector<8x1xf32>
    %cst_25 = arith.constant 3.200000e+01 : f32
    %47 = vector.broadcast %cst_25 : f32 to vector<8x1xf32>
    %48 = arith.divf %46, %47 : vector<8x1xf32>
    %49 = vector.broadcast %41 : vector<8x1xf32> to vector<8x32xf32>
    %50 = arith.subf %37, %49 : vector<8x32xf32>
    %cst_26 = arith.constant 9.99999974E-6 : f32
    %51 = vector.broadcast %cst_26 : f32 to vector<8x1xf32>
    %52 = arith.addf %48, %51 : vector<8x1xf32>
    %53 = math.rsqrt %52 : vector<8x1xf32>
    %54 = vector.broadcast %53 : vector<8x1xf32> to vector<8x32xf32>
    %55 = arith.mulf %50, %54 : vector<8x32xf32>
    %c0_27 = arith.constant 0 : index
    %c0_28 = arith.constant 0 : index
    %56 = vector.load %arg10[%c0_27, %c0_28] : memref<1x32xf32, #tpu.memory_space<vmem>>, vector<1x32xf32>
    %57 = vector.broadcast %56 : vector<1x32xf32> to vector<8x32xf32>
    %58 = arith.mulf %55, %57 : vector<8x32xf32>
    %c0_29 = arith.constant 0 : index
    %c0_30 = arith.constant 0 : index
    %59 = vector.load %arg11[%c0_29, %c0_30] : memref<1x32xf32, #tpu.memory_space<vmem>>, vector<1x32xf32>
    %60 = vector.broadcast %59 : vector<1x32xf32> to vector<8x32xf32>
    %61 = arith.addf %58, %60 : vector<8x32xf32>
    %62 = arith.truncf %61 : vector<8x32xf32> to vector<8x32xbf16>
    %c0_31 = arith.constant 0 : index
    %c0_32 = arith.constant 0 : index
    %63 = vector.load %arg12[%c0_31, %c0_32] : memref<32x64xbf16, #tpu.memory_space<vmem>>, vector<32x64xbf16>
    %cst_33 = arith.constant dense<0.000000e+00> : vector<8x64xf32>
    %64 = tpu.matmul %62, %63, %cst_33 {dimension_numbers = #tpu.dot_dimension_numbers<[1], [0], [0], [1], [0, 0, 1, 1], [], []>} : vector<8x32xbf16>, vector<32x64xbf16>, vector<8x64xf32> -> vector<8x64xf32>
    %c0_34 = arith.constant 0 : index
    %c0_35 = arith.constant 0 : index
    %65 = vector.load %arg13[%c0_34, %c0_35] : memref<1x64xf32, #tpu.memory_space<vmem>>, vector<1x64xf32>
    %66 = vector.broadcast %65 : vector<1x64xf32> to vector<8x64xf32>
    %67 = arith.addf %64, %66 : vector<8x64xf32>
    %cst_36 = arith.constant 0.000000e+00 : f32
    %68 = vector.broadcast %cst_36 : f32 to vector<8x64xf32>
    %69 = arith.maximumf %67, %68 : vector<8x64xf32>
    %70 = arith.truncf %69 : vector<8x64xf32> to vector<8x64xbf16>
    %c0_37 = arith.constant 0 : index
    %c0_38 = arith.constant 0 : index
    %71 = vector.load %arg14[%c0_37, %c0_38] : memref<64x32xbf16, #tpu.memory_space<vmem>>, vector<64x32xbf16>
    %cst_39 = arith.constant dense<0.000000e+00> : vector<8x32xf32>
    %72 = tpu.matmul %70, %71, %cst_39 {dimension_numbers = #tpu.dot_dimension_numbers<[1], [0], [0], [1], [0, 0, 1, 1], [], []>} : vector<8x64xbf16>, vector<64x32xbf16>, vector<8x32xf32> -> vector<8x32xf32>
    %c0_40 = arith.constant 0 : index
    %c0_41 = arith.constant 0 : index
    %73 = vector.load %arg15[%c0_40, %c0_41] : memref<1x32xf32, #tpu.memory_space<vmem>>, vector<1x32xf32>
    %74 = vector.broadcast %73 : vector<1x32xf32> to vector<8x32xf32>
    %75 = arith.addf %72, %74 : vector<8x32xf32>
    %76 = arith.addf %61, %75 : vector<8x32xf32>
    %cst_42 = arith.constant dense<0.000000e+00> : vector<8xf32>
    %77 = vector.multi_reduction <add>, %76, %cst_42 [1] : vector<8x32xf32> to vector<8xf32>
    %78 = vector.shape_cast %77 : vector<8xf32> to vector<8x1xf32>
    %cst_43 = arith.constant 3.200000e+01 : f32
    %79 = vector.broadcast %cst_43 : f32 to vector<8x1xf32>
    %80 = arith.divf %78, %79 : vector<8x1xf32>
    %81 = vector.broadcast %80 : vector<8x1xf32> to vector<8x32xf32>
    %82 = arith.subf %76, %81 : vector<8x32xf32>
    %83 = arith.mulf %82, %82 : vector<8x32xf32>
    %cst_44 = arith.constant dense<0.000000e+00> : vector<8xf32>
    %84 = vector.multi_reduction <add>, %83, %cst_44 [1] : vector<8x32xf32> to vector<8xf32>
    %85 = vector.shape_cast %84 : vector<8xf32> to vector<8x1xf32>
    %cst_45 = arith.constant 3.200000e+01 : f32
    %86 = vector.broadcast %cst_45 : f32 to vector<8x1xf32>
    %87 = arith.divf %85, %86 : vector<8x1xf32>
    %88 = vector.broadcast %80 : vector<8x1xf32> to vector<8x32xf32>
    %89 = arith.subf %76, %88 : vector<8x32xf32>
    %cst_46 = arith.constant 9.99999974E-6 : f32
    %90 = vector.broadcast %cst_46 : f32 to vector<8x1xf32>
    %91 = arith.addf %87, %90 : vector<8x1xf32>
    %92 = math.rsqrt %91 : vector<8x1xf32>
    %93 = vector.broadcast %92 : vector<8x1xf32> to vector<8x32xf32>
    %94 = arith.mulf %89, %93 : vector<8x32xf32>
    %c0_47 = arith.constant 0 : index
    %c0_48 = arith.constant 0 : index
    %95 = vector.load %arg16[%c0_47, %c0_48] : memref<1x32xf32, #tpu.memory_space<vmem>>, vector<1x32xf32>
    %96 = vector.broadcast %95 : vector<1x32xf32> to vector<8x32xf32>
    %97 = arith.mulf %94, %96 : vector<8x32xf32>
    %c0_49 = arith.constant 0 : index
    %c0_50 = arith.constant 0 : index
    %98 = vector.load %arg17[%c0_49, %c0_50] : memref<1x32xf32, #tpu.memory_space<vmem>>, vector<1x32xf32>
    %99 = vector.broadcast %98 : vector<1x32xf32> to vector<8x32xf32>
    %100 = arith.addf %97, %99 : vector<8x32xf32>
    %c0_51 = arith.constant 0 : index
    %c0_52 = arith.constant 0 : index
    %c0_53 = arith.constant 0 : index
    %101 = vector.load %arg18[%c0_51, %c0_52, %c0_53] : memref<1x8x32xf32, #tpu.memory_space<vmem>>, vector<1x8x32xf32>
    %102 = vector.shape_cast %101 : vector<1x8x32xf32> to vector<8x32xf32>
    %103 = vector.shape_cast %100 : vector<8x32xf32> to vector<1x8x32xf32>
    tpu.vector_store %arg18[%c0_51, %c0_52, %c0_53], %103 {strides = array<i32>} : memref<1x8x32xf32, #tpu.memory_space<vmem>>, vector<1x8x32xf32>,
    return
  }
  func.func @transform_0(%arg0: i32, %arg1: i32) -> (i32, i32, i32) {
    %c0_i32 = arith.constant 0 : i32
    %c0_i32_0 = arith.constant 0 : i32
    %c0_i32_1 = arith.constant 0 : i32
    return %arg0, %c0_i32, %c0_i32_0 : i32, i32, i32
  }
  func.func @transform_1(%arg0: i32, %arg1: i32) -> (i32, i32, i32) {
    %c0_i32 = arith.constant 0 : i32
    %c0_i32_0 = arith.constant 0 : i32
    return %arg0, %arg1, %c0_i32 : i32, i32, i32
  }
  func.func @transform_2(%arg0: i32, %arg1: i32) -> (i32, i32) {
    %c0_i32 = arith.constant 0 : i32
    %c0_i32_0 = arith.constant 0 : i32
    %c0_i32_1 = arith.constant 0 : i32
    return %c0_i32, %c0_i32_0 : i32, i32
  }
  func.func @transform_3(%arg0: i32, %arg1: i32) -> (i32, i32) {
    %c0_i32 = arith.constant 0 : i32
    %c0_i32_0 = arith.constant 0 : i32
    %c0_i32_1 = arith.constant 0 : i32
    return %c0_i32, %c0_i32_0 : i32, i32
  }
  func.func @transform_4(%arg0: i32, %arg1: i32) -> (i32, i32) {
    %c0_i32 = arith.constant 0 : i32
    %c0_i32_0 = arith.constant 0 : i32
    %c0_i32_1 = arith.constant 0 : i32
    return %c0_i32, %c0_i32_0 : i32, i32
  }
  func.func @transform_5(%arg0: i32, %arg1: i32) -> (i32, i32) {
    %c0_i32 = arith.constant 0 : i32
    %c0_i32_0 = arith.constant 0 : i32
    %c0_i32_1 = arith.constant 0 : i32
    return %c0_i32, %c0_i32_0 : i32, i32
  }
  func.func @transform_6(%arg0: i32, %arg1: i32) -> (i32, i32) {
    %c0_i32 = arith.constant 0 : i32
    %c0_i32_0 = arith.constant 0 : i32
    %c0_i32_1 = arith.constant 0 : i32
    return %c0_i32, %c0_i32_0 : i32, i32
  }
  func.func @transform_7(%arg0: i32, %arg1: i32) -> (i32, i32) {
    %c0_i32 = arith.constant 0 : i32
    %c0_i32_0 = arith.constant 0 : i32
    %c0_i32_1 = arith.constant 0 : i32
    return %c0_i32, %c0_i32_0 : i32, i32
  }
  func.func @transform_8(%arg0: i32, %arg1: i32) -> (i32, i32) {
    %c0_i32 = arith.constant 0 : i32
    %c0_i32_0 = arith.constant 0 : i32
    %c0_i32_1 = arith.constant 0 : i32
    return %c0_i32, %c0_i32_0 : i32, i32
  }
  func.func @transform_9(%arg0: i32, %arg1: i32) -> (i32, i32) {
    %c0_i32 = arith.constant 0 : i32
    %c0_i32_0 = arith.constant 0 : i32
    %c0_i32_1 = arith.constant 0 : i32
    return %c0_i32, %c0_i32_0 : i32, i32
  }
  func.func @transform_10(%arg0: i32, %arg1: i32) -> (i32, i32) {
    %c0_i32 = arith.constant 0 : i32
    %c0_i32_0 = arith.constant 0 : i32
    %c0_i32_1 = arith.constant 0 : i32
    return %c0_i32, %c0_i32_0 : i32, i32
  }
  func.func @transform_11(%arg0: i32, %arg1: i32) -> (i32, i32) {
    %c0_i32 = arith.constant 0 : i32
    %c0_i32_0 = arith.constant 0 : i32
    %c0_i32_1 = arith.constant 0 : i32
    return %c0_i32, %c0_i32_0 : i32, i32
  }
  func.func @transform_12(%arg0: i32, %arg1: i32) -> (i32, i32) {
    %c0_i32 = arith.constant 0 : i32
    %c0_i32_0 = arith.constant 0 : i32
    %c0_i32_1 = arith.constant 0 : i32
    return %c0_i32, %c0_i32_0 : i32, i32
  }
  func.func @transform_13(%arg0: i32, %arg1: i32) -> (i32, i32) {
    %c0_i32 = arith.constant 0 : i32
    %c0_i32_0 = arith.constant 0 : i32
    %c0_i32_1 = arith.constant 0 : i32
    return %c0_i32, %c0_i32_0 : i32, i32
  }
  func.func @transform_14(%arg0: i32, %arg1: i32) -> (i32, i32) {
    %c0_i32 = arith.constant 0 : i32
    %c0_i32_0 = arith.constant 0 : i32
    %c0_i32_1 = arith.constant 0 : i32
    return %c0_i32, %c0_i32_0 : i32, i32
  }
  func.func @transform_15(%arg0: i32, %arg1: i32) -> (i32, i32) {
    %c0_i32 = arith.constant 0 : i32
    %c0_i32_0 = arith.constant 0 : i32
    %c0_i32_1 = arith.constant 0 : i32
    return %c0_i32, %c0_i32_0 : i32, i32
  }
  func.func @transform_16(%arg0: i32, %arg1: i32) -> (i32, i32, i32) {
    %c0_i32 = arith.constant 0 : i32
    %c0_i32_0 = arith.constant 0 : i32
    return %arg0, %arg1, %c0_i32 : i32, i32, i32
  }
}

</mosaic_0001>

<bundles_post_ra>
// kernel: transformer_encoder.2
= control target key start
LH: loop header
LB: loop body
LE: loop exit
PB: predicated region body
PF: predicated region fallthrough
CT: control target
= control target key end

     0   :  { %s2479_s21 = smov 0   ;;  %s2481_s22 = smov 0   ;;  %s2744_s0 = inlined_call_operand.vmem [shape: f32[2,8,32], index: 0, kind: input, shape index: {}, may-alias: {0,1}]   ;;  %s2745_s1 = inlined_call_operand.vmem [shape: f32[2,8,32], index: 1, kind: input, shape index: {}, may-alias: {0,1}]   ;;  %s2746_s2 = inlined_call_operand.vmem [shape: bf16[32,32], index: 2, kind: input, shape index: {}]   ;;  %s2747_s3 = inlined_call_operand.vmem [shape: f32[1,32], index: 3, kind: input, shape index: {}]   ;;  %s2748_s4 = inlined_call_operand.vmem [shape: bf16[32,64], index: 4, kind: input, shape index: {}]   ;;  %s2749_s5 = inlined_call_operand.vmem [shape: f32[1,64], index: 5, kind: input, shape index: {}]   ;;  %s2750_s6 = inlined_call_operand.vmem [shape: bf16[32,32], index: 6, kind: input, shape index: {}]   ;;  %s2751_s7 = inlined_call_operand.vmem [shape: f32[1,32], index: 7, kind: input, shape index: {}]   ;;  %s2752_s8 = inlined_call_operand.vmem [shape: f32[1,32], index: 8, kind: input, shape index: {}]   ;;  %s2753_s9 = inlined_call_operand.vmem [shape: f32[1,32], index: 9, kind: input, shape index: {}]   ;;  %s2754_s10 = inlined_call_operand.vmem [shape: bf16[32,64], index: 10, kind: input, shape index: {}]   ;;  %s2755_s11 = inlined_call_operand.vmem [shape: f32[1,64], index: 11, kind: input, shape index: {}]   ;;  %s2756_s12 = inlined_call_operand.vmem [shape: bf16[64,32], index: 12, kind: input, shape index: {}]   ;;  %s2757_s13 = inlined_call_operand.vmem [shape: f32[1,32], index: 13, kind: input, shape index: {}]   ;;  %s2758_s14 = inlined_call_operand.vmem [shape: f32[1,32], index: 14, kind: input, shape index: {}]   ;;  %s2759_s15 = inlined_call_operand.vmem [shape: f32[1,32], index: 15, kind: input, shape index: {}]   ;;  %s2760_s16 = inlined_call_operand.vmem [shape: f32[2,8,32], index: 16, kind: output, shape index: {}]  }
   0x1   :  { %2761 = sst [smem:[#allocation4_spill]] %s2744_s0  ;;  %s2483_s23 = smov 0  }
   0x2 LB: > { %s38_s24 = sadd.s32 1, %s2377_s22  ;;  %p2119_p0 = scmp.ge.s32.totalorder %s2381_s23, 1  ;;  %s2381_s23 = sphi %s2483_s23, %s26_s23   ;;  %s2377_s22 = sphi %s2481_s22, %s2764_s22   ;;  %s2373_s21 = sphi %s2479_s21, %s2763_s21  }
   0x3   : > { %p40_p1 = scmp.ge.s32.totalorder %s38_s24, 2  ;;  %p489_p2 = scmp.lt.s32.totalorder %s2381_s23, 3 }
   0x5   : > { %s2766_s24 = smov (%p40_p1, %s38_s24), 0  ;;  %p490_p3 = pnand %p2119_p0, %p489_p2 }
   0x6   : > { %p547_p4 = scmp.lt.s32.totalorder (!%p490_p3), %s2373_s21, 1  ;;  %s2762_s17 = sld [smem:[#allocation4_spill]] (!%p490_p3) }
   0x7   : > { %493 = sbr.rel (%p490_p3) target bundleno = 2282 (0x8ea), region = 84  ;;  %s2387_s25 = smov (!%p490_p3), 112  }
   0x8   : > { %s2388_s26 = smov (!%p490_p3), 96   ;;  %s2391_s0 = smov (!%p490_p3), 16  }
   0xc   : > { %v2327_v0 = vld [vmem:[%s2748_s4 + $0x8] sm:$0xff]   ;;  %v2383_v1 = vmov 0.0   ;;  %v2328_v2 = vld [vmem:[%s2748_s4] sm:$0xff]   ;;  %vm2384_vm0 = vmmov 0   ;;  %s2768_s21 = smov (!%p547_p4, %s2373_s21), 1  ;;  %vm595_vm1 = vcmask 261120   ;;  %v654_v23 = vlaneseq }
   0xd   : > { %2200 = vmatprep.subr.bf16.mxu1 %v2383_v1  ;;  %2216 = vmatprep.subr.bf16.mxu0 %v2383_v1  ;;  %s2510_s29 = sshll.u32 %s2768_s21, 3  ;;  %v2329_v4 = vld [vmem:[%s2746_s2 + $0x8] sm:$0xff]   ;;  %v2330_v7 = vld [vmem:[%s2746_s2] sm:$0xff]   ;;  %v2389_v21 = vmov 1983009808   ;;  %vm789_vm2 = vcmask 60416  }
   0xe   : > { %2201 = vmatpush3.bf16.msra.mxu1 %v2327_v0  ;;  %2204 = vmatprep.mubr.msk.bf16.mxu1 %vm2384_vm0, %v2383_v1  ;;  %s550_s18 = scalar_lea.vmem %s2762_s17, %s2510_s29  ;;  %s557_s27 = scalar_lea.vmem %s2745_s1, %s2510_s29  ;;  %v2123_v9 = vld [vmem:[%s2749_s5] ss:$0 sm:$0xff]  ;;  %v652_v22 = vunpack.c.l.s4 %v2389_v21  ;;  %v2390_v24 = vmov 1934713408   ;;  %v655_v27 = vshrl.u32 %v654_v23, 7  ;;  %vm1173_vm3 = vcmask 64512  }
   0xf   : > { %2202 = vmatprep.subr.bf16.mxu1 %v2383_v1  ;;  %2218 = vmatprep.mubr.msk.bf16.mxu0 %vm2384_vm0, %v2383_v1  ;;  %v570_v3 = vld [vmem:[%s550_s18] sm:$0xff]  ;;  %s2385_s17 = smov 104   ;;  %s2386_s18 = smov 120   ;;  %v684_v25 = vunpack.c.l.s4 %v2390_v24  ;;  %vm1405_vm4 = vcmask 1043456   ;;  %vm1744_vm5 = vcmask 130048   ;;  %vm1746_vm6 = vcmask 195584  }
  0x10   : > { %v571_v5 = vpack.c.bf16 %v570_v3, %v570_v3  ;;  %v2525_v6 = vld [vmem:[%s557_s27] sm:$0xff]  ;;  %v653_v26 = vunpack.c.0.s8 %v652_v22  ;;  %vm1954_vm7 = vcmask 523264   ;;  %s564_s28 = scalar_lea.vmem %s2760_s16, %s2510_s29 }
  0x11   : > { %v951_v8 = vpack.c.bf16 %v2525_v6, %v2525_v6  ;;  %v2131_v15 = vld [vmem:[%s2747_s3] ss:$0 sm:$0xff]  ;;  %v685_v30 = vunpack.c.0.s8 %v684_v25 }
  0x12   : > { %2203 = vmatpush3.bf16.msra.mxu1 %v2328_v2  ;;  %v2545_v31 = vsub.s32 %v653_v26, %v655_v27 }
  0x13   : > { %2208 = vmatprep.subr.bf16.mxu1 %v2383_v1  ;;  %v2547_v37 = vsub.s32 %v685_v30, %v655_v27 }
  0x15   : > { %2205 = vmatmul.mubr.msk.bf16.vlgmr.msra.gmra.mxu1 %vm595_vm1, %v571_v5 }
  0x16   : > { %2209 = vmatpush3.bf16.msra.mxu1 %v2329_v4  ;;  %2212 = vmatprep.mubr.msk.bf16.mxu1 %vm2384_vm0, %v2383_v1 }
  0x17   : > { %2210 = vmatprep.subr.bf16.mxu1 %v2383_v1 }
  0x1a   : > { %2211 = vmatpush3.bf16.msra.mxu1 %v2330_v7 }
  0x1b   : > { %2222 = vmatprep.subr.bf16.mxu1 %v2383_v1 }
  0x1d   : > { %2213 = vmatmul.mubr.msk.bf16.vlgmr.msra.gmra.mxu1 %vm595_vm1, %v951_v8 }
  0x1e   : > { %2224 = vmatprep.mubr.msk.bf16.mxu1 %vm2384_vm0, %v2383_v1 }
  0xd5   : > { %v633_v10 = vpop.f32.mrf.mxu1 }
  0xd6   : > { %v634_v11 = vadd.f32 %v2123_v9, %v633_v10 }
  0xd7   : > { %v2206_v12 = vpop.f32.mrf.mxu1 }
  0xd8   : > { %646 = vrot.lane.b32.xlu1 %v634_v11, %s2385_s17  ;;  %640 = vrot.lane.b32.xlu0 %v634_v11, %s2386_s18 }
  0xd9   : > { %v636_v13 = vpop.f32.mrf.mxu1 }
  0xdb   : > { %v2207_v14 = vpop.f32.mrf.mxu1 }
  0xdc   : > { %643 = vrot.lane.b32.xlu0 %v634_v11, %s2387_s25 }
  0xdd   : > { %v1013_v16 = vpop.f32.mrf.mxu1 }
  0xde   : > { %v1014_v17 = vadd.f32 %v2131_v15, %v1013_v16 }
  0xdf   : > { %v2214_v18 = vpop.f32.mrf.mxu1 }
  0xe0   : > { %1023 = vrot.lane.b32.xlu0 %v1014_v17, %s2387_s25  ;;  %1020 = vrot.lane.b32.xlu1 %v1014_v17, %s2386_s18  ;;  %s2393_s18 = smov 24  }
  0xe1   : > { %v1016_v19 = vpop.f32.mrf.mxu1 }
  0xe3   : > { %v2215_v20 = vpop.f32.mrf.mxu1 }
  0xe4   : > { %794 = vrot.lane.b32.xlu0 %v634_v11, %s2388_s26  ;;  %1026 = vrot.lane.b32.xlu1 %v1014_v17, %s2385_s17  ;;  %s2392_s17 = smov 8  }
 0x14a   : > { %v647_v28 = vpop.permute.xlu1 %646  ;;  %v641_v29 = vpop.permute.xlu0 %640 }
 0x14b   : > { %796 = vrot.lane.b32.xlu1 %v641_v29, %s2388_s26  ;;  %v665_v32 = vcombine.low %v641_v29, %v647_v28  ;;  %v666_v33 = vcombine.high %v641_v29, %v647_v28 }
 0x14d   : > { %v673_v38 = vrot.slane %v665_v32, %v2545_v31  ;;  %v680_v39 = vrot.slane %v666_v33, %v2545_v31 }
 0x14e   : > { %v644_v34 = vpop.permute.xlu0 %643 }
 0x14f   : > { %v649_v35 = vcombine.low %v634_v11, %v644_v34  ;;  %v650_v36 = vcombine.high %v634_v11, %v644_v34  ;;  %798 = vrot.lane.b32.xlu0 %v644_v34, %s2388_s26  ;;  %800 = vrot.lane.b32.xlu1 %v647_v28, %s2388_s26 }
 0x151   : > { %v657_v40 = vrot.slane %v649_v35, %v2545_v31  ;;  %v664_v41 = vrot.slane %v650_v36, %v2545_v31 }
 0x152   : > { %v1021_v42 = vpop.permute.xlu1 %1020  ;;  %v1024_v47 = vpop.permute.xlu0 %1023 }
 0x153   : > { %v681_v43 = vcombine.low %v657_v40, %v673_v38  ;;  %v682_v44 = vcombine.high %v657_v40, %v673_v38  ;;  %v697_v45 = vcombine.low %v664_v41, %v680_v39  ;;  %v698_v46 = vcombine.high %v664_v41, %v680_v39 }
 0x154   : > { %v1029_v52 = vcombine.low %v1014_v17, %v1024_v47  ;;  %v1030_v53 = vcombine.high %v1014_v17, %v1024_v47 }
 0x155   : > { %v689_v48 = vrot.slane %v681_v43, %v2547_v37  ;;  %v696_v49 = vrot.slane %v682_v44, %v2547_v37  ;;  %v705_v50 = vrot.slane %v697_v45, %v2547_v37  ;;  %v712_v51 = vrot.slane %v698_v46, %v2547_v37 }
 0x156   : > { %v1027_v54 = vpop.permute.xlu1 %1026  ;;  %v1037_v2 = vrot.slane %v1029_v52, %v2545_v31  ;;  %v1044_v3 = vrot.slane %v1030_v53, %v2545_v31 }
 0x157   : > { %v717_v55 = vcombine.low %v689_v48, %v696_v49  ;;  %v2127_v56 = vcombine.high %v689_v48, %v696_v49  ;;  %v733_v57 = vcombine.low %v705_v50, %v712_v51  ;;  %v2128_v58 = vcombine.high %v705_v50, %v712_v51 }
 0x158   : > { %v1045_v59 = vcombine.low %v1021_v42, %v1027_v54  ;;  %v1046_v60 = vcombine.high %v1021_v42, %v1027_v54 }
 0x159   : > { %v724_v61 = vrot.slane %v717_v55, %v2545_v31  ;;  %v732_v62 = vrot.slane %v2127_v56, %v2545_v31  ;;  %v740_v63 = vrot.slane %v733_v57, %v2545_v31  ;;  %v748_v0 = vrot.slane %v2128_v58, %v2545_v31 }
 0x15a   : > { %v1053_v4 = vrot.slane %v1045_v59, %v2545_v31  ;;  %v1060_v5 = vrot.slane %v1046_v60, %v2545_v31 }
 0x15b   : > { %v749_v7 = vcombine.low %v724_v61, %v732_v62  ;;  %v750_v8 = vcombine.high %v724_v61, %v732_v62  ;;  %v765_v9 = vcombine.low %v740_v63, %v748_v0  ;;  %v766_v10 = vcombine.high %v740_v63, %v748_v0 }
 0x15c   : > { %v1061_v11 = vcombine.low %v1037_v2, %v1053_v4  ;;  %v1062_v12 = vcombine.high %v1037_v2, %v1053_v4  ;;  %v1077_v13 = vcombine.low %v1044_v3, %v1060_v5  ;;  %v1078_v14 = vcombine.high %v1044_v3, %v1060_v5  ;;  %v795_v2 = vpop.permute.xlu0 %794 }
 0x15d   : > { %v757_v15 = vrot.slane %v749_v7, %v2547_v37  ;;  %v764_v16 = vrot.slane %v750_v8, %v2547_v37  ;;  %v773_v17 = vrot.slane %v765_v9, %v2547_v37  ;;  %v780_v18 = vrot.slane %v766_v10, %v2547_v37 }
 0x15e   : > { %v1069_v19 = vrot.slane %v1061_v11, %v2547_v37  ;;  %v1076_v20 = vrot.slane %v1062_v12, %v2547_v37  ;;  %v1085_v21 = vrot.slane %v1077_v13, %v2547_v37  ;;  %v1092_v22 = vrot.slane %v1078_v14, %v2547_v37 }
 0x15f   : > { %v781_v23 = vcombine.low %v757_v15, %v773_v17  ;;  %v782_v24 = vcombine.high %v757_v15, %v773_v17  ;;  %v783_v25 = vcombine.low %v764_v16, %v780_v18  ;;  %v784_v26 = vcombine.high %v764_v16, %v780_v18 }
 0x160   : > { %v1097_v27 = vcombine.low %v1069_v19, %v1076_v20  ;;  %v2135_v28 = vcombine.high %v1069_v19, %v1076_v20  ;;  %v1113_v29 = vcombine.low %v1085_v21, %v1092_v22  ;;  %v2136_v30 = vcombine.high %v1085_v21, %v1092_v22 }
 0x161   : > { %v785_v32 = vpack.c.bf16 %v781_v23, %v781_v23  ;;  %v786_v33 = vpack.c.bf16 %v782_v24, %v782_v24  ;;  %v787_v34 = vpack.c.bf16 %v783_v25, %v783_v25  ;;  %v788_v35 = vpack.c.bf16 %v784_v26, %v784_v26 }
 0x162   : > { %v1104_v36 = vrot.slane %v1097_v27, %v2545_v31  ;;  %v1112_v38 = vrot.slane %v2135_v28, %v2545_v31  ;;  %v1120_v39 = vrot.slane %v1113_v29, %v2545_v31  ;;  %v1128_v40 = vrot.slane %v2136_v30, %v2545_v31 }
 0x163   : > { %790 = vst.msk [vmem:[#allocation2] sm:$0xf] %vm789_vm2, %v785_v32  ;;  %791 = vst.msk [vmem:[#allocation2 + $0x4] sm:$0xf] %vm789_vm2, %v786_v33 }
 0x164   : > { %792 = vst.msk [vmem:[#allocation2 + $0x8] sm:$0xf] %vm789_vm2, %v787_v34  ;;  %793 = vst.msk [vmem:[#allocation2 + $0xc] sm:$0xf] %vm789_vm2, %v788_v35  ;;  %v1129_v41 = vcombine.low %v1104_v36, %v1112_v38  ;;  %v1145_v42 = vcombine.low %v1120_v39, %v1128_v40  ;;  %v1130_v49 = vcombine.high %v1104_v36, %v1112_v38 }
 0x165   : > { %v1146_v50 = vcombine.high %v1120_v39, %v1128_v40 }
 0x166   : > { %v1137_v43 = vrot.slane %v1129_v41, %v2547_v37  ;;  %v1153_v44 = vrot.slane %v1145_v42, %v2547_v37  ;;  %v1144_v57 = vrot.slane %v1130_v49, %v2547_v37 }
 0x167   : > { %v1160_v58 = vrot.slane %v1146_v50, %v2547_v37 }
 0x168   : > { %v1161_v51 = vcombine.low %v1137_v43, %v1153_v44  ;;  %v1162_v52 = vcombine.high %v1137_v43, %v1153_v44 }
 0x169   : > { %v1163_v61 = vcombine.low %v1144_v57, %v1160_v58  ;;  %v1164_v62 = vcombine.high %v1144_v57, %v1160_v58 }
 0x16a   : > { %v1169_v45 = vld [vmem:[#allocation2] sm:$0xf]  ;;  %v1170_v46 = vld [vmem:[#allocation2 + $0x4] sm:$0xf]  ;;  %v1165_v55 = vpack.c.bf16 %v1161_v51, %v1161_v51  ;;  %v1166_v56 = vpack.c.bf16 %v1162_v52, %v1162_v52 }
 0x16b   : > { %v1178_v47 = vsel %vm1173_vm3, %v1169_v45, 0  ;;  %v1224_v48 = vsel %vm1173_vm3, %v1170_v46, 0  ;;  %v1171_v53 = vld [vmem:[#allocation2 + $0x8] sm:$0xf]  ;;  %v1172_v54 = vld [vmem:[#allocation2 + $0xc] sm:$0xf]  ;;  %v1167_v63 = vpack.c.bf16 %v1163_v61, %v1163_v61  ;;  %v1168_v0 = vpack.c.bf16 %v1164_v62, %v1164_v62 }
 0x16c   : > { %2217 = vmatpush3.bf16.xpose.msra.mxu0 %v1178_v47  ;;  %2223 = vmatpush3.bf16.xpose.msra.mxu1 %v1224_v48  ;;  %v1270_v59 = vsel %vm1173_vm3, %v1171_v53, 0  ;;  %v1316_v60 = vsel %vm1173_vm3, %v1172_v54, 0 }
 0x16d   : > { %2228 = vmatprep.subr.bf16.mxu0 %v2383_v1  ;;  %2234 = vmatprep.subr.bf16.mxu1 %v2383_v1 }
 0x173   : > { %2219 = vmatmul.mubr.msk.bf16.vlgmr.msra.gmra.mxu0 %vm1173_vm3, %v1165_v55  ;;  %2225 = vmatmul.mubr.msk.bf16.vlgmr.msra.gmra.mxu1 %vm1173_vm3, %v1166_v56 }
 0x174   : > { %2229 = vmatpush3.bf16.xpose.msra.mxu0 %v1270_v59  ;;  %2235 = vmatpush3.bf16.xpose.msra.mxu1 %v1316_v60 }
 0x175   : > { %2230 = vmatprep.mubr.msk.bf16.mxu0 %vm2384_vm0, %v2383_v1  ;;  %2236 = vmatprep.mubr.msk.bf16.mxu1 %vm2384_vm0, %v2383_v1 }
 0x176   : > { %2240 = vmatprep.subr.bf16.mxu0 %v2383_v1  ;;  %2246 = vmatprep.subr.bf16.mxu1 %v2383_v1 }
 0x17b   : > { %2231 = vmatmul.mubr.msk.bf16.vlgmr.msra.gmra.mxu0 %vm1173_vm3, %v1167_v63  ;;  %2237 = vmatmul.mubr.msk.bf16.vlgmr.msra.gmra.mxu1 %vm1173_vm3, %v1168_v0 }
 0x17c   : > { %2242 = vmatprep.mubr.msk.bf16.mxu0 %vm2384_vm0, %v2383_v1  ;;  %2248 = vmatprep.mubr.msk.bf16.mxu1 %vm2384_vm0, %v2383_v1 }
 0x1bd   : > { %v797_v3 = vpop.permute.xlu1 %796 }
 0x1c1   : > { %v799_v4 = vpop.permute.xlu0 %798  ;;  %v801_v5 = vpop.permute.xlu1 %800 }
 0x1c2   : > { %v806_v7 = vcombine.low %v795_v2, %v799_v4  ;;  %v807_v8 = vcombine.high %v795_v2, %v799_v4  ;;  %v822_v9 = vcombine.low %v797_v3, %v801_v5  ;;  %v823_v10 = vcombine.high %v797_v3, %v801_v5 }
 0x1c4   : > { %v814_v11 = vrot.slane %v806_v7, %v2545_v31  ;;  %v821_v12 = vrot.slane %v807_v8, %v2545_v31  ;;  %v830_v13 = vrot.slane %v822_v9, %v2545_v31  ;;  %v837_v14 = vrot.slane %v823_v10, %v2545_v31 }
 0x1c6   : > { %v838_v15 = vcombine.low %v814_v11, %v830_v13  ;;  %v839_v16 = vcombine.high %v814_v11, %v830_v13  ;;  %v854_v17 = vcombine.low %v821_v12, %v837_v14  ;;  %v855_v18 = vcombine.high %v821_v12, %v837_v14 }
 0x1c8   : > { %v846_v19 = vrot.slane %v838_v15, %v2547_v37  ;;  %v853_v20 = vrot.slane %v839_v16, %v2547_v37  ;;  %v862_v21 = vrot.slane %v854_v17, %v2547_v37  ;;  %v869_v22 = vrot.slane %v855_v18, %v2547_v37 }
 0x1ca   : > { %v874_v23 = vcombine.low %v846_v19, %v853_v20  ;;  %v2129_v24 = vcombine.high %v846_v19, %v853_v20  ;;  %v890_v25 = vcombine.low %v862_v21, %v869_v22  ;;  %v2130_v26 = vcombine.high %v862_v21, %v869_v22 }
 0x1cc   : > { %v881_v27 = vrot.slane %v874_v23, %v2545_v31  ;;  %v889_v28 = vrot.slane %v2129_v24, %v2545_v31  ;;  %v897_v29 = vrot.slane %v890_v25, %v2545_v31  ;;  %v905_v30 = vrot.slane %v2130_v26, %v2545_v31 }
 0x1ce   : > { %v906_v32 = vcombine.low %v881_v27, %v889_v28  ;;  %v907_v33 = vcombine.high %v881_v27, %v889_v28  ;;  %v922_v34 = vcombine.low %v897_v29, %v905_v30  ;;  %v923_v35 = vcombine.high %v897_v29, %v905_v30 }
 0x1d0   : > { %v914_v36 = vrot.slane %v906_v32, %v2547_v37  ;;  %v921_v38 = vrot.slane %v907_v33, %v2547_v37  ;;  %v930_v39 = vrot.slane %v922_v34, %v2547_v37  ;;  %v937_v40 = vrot.slane %v923_v35, %v2547_v37 }
 0x1d2   : > { %v938_v41 = vcombine.low %v914_v36, %v930_v39  ;;  %v939_v42 = vcombine.high %v914_v36, %v930_v39  ;;  %v940_v43 = vcombine.low %v921_v38, %v937_v40  ;;  %v941_v44 = vcombine.high %v921_v38, %v937_v40 }
 0x1d4   : > { %v942_v45 = vpack.c.bf16 %v938_v41, %v938_v41  ;;  %v943_v46 = vpack.c.bf16 %v939_v42, %v939_v42  ;;  %v944_v47 = vpack.c.bf16 %v940_v43, %v940_v43  ;;  %v945_v48 = vpack.c.bf16 %v941_v44, %v941_v44 }
 0x1d6   : > { %946 = vst.msk [vmem:[#allocation3] sm:$0xf] %vm789_vm2, %v942_v45  ;;  %947 = vst.msk [vmem:[#allocation3 + $0x4] sm:$0xf] %vm789_vm2, %v943_v46 }
 0x1d7   : > { %948 = vst.msk [vmem:[#allocation3 + $0x8] sm:$0xf] %vm789_vm2, %v944_v47  ;;  %949 = vst.msk [vmem:[#allocation3 + $0xc] sm:$0xf] %vm789_vm2, %v945_v48 }
 0x1dd   : > { %v1398_v49 = vld [vmem:[#allocation3] sm:$0xf]  ;;  %v1399_v50 = vld [vmem:[#allocation3 + $0x4] sm:$0xf] }
 0x1de   : > { %v1407_v51 = vsel %vm1405_vm4, %v1398_v49, 0  ;;  %v1453_v52 = vsel %vm1405_vm4, %v1399_v50, 0  ;;  %v1400_v24 = vld [vmem:[#allocation3 + $0x8] sm:$0xf]  ;;  %v1401_v28 = vld [vmem:[#allocation3 + $0xc] sm:$0xf] }
 0x1df   : > { %2241 = vmatpush3.bf16.msra.mxu0 %v1407_v51  ;;  %2247 = vmatpush3.bf16.msra.mxu1 %v1453_v52  ;;  %v1499_v32 = vsel %vm1405_vm4, %v1400_v24, 0  ;;  %v1545_v33 = vsel %vm1405_vm4, %v1401_v28, 0  ;;  %v2332_v28 = vld [vmem:[%s2750_s6] sm:$0xff]  }
 0x1e0   : > { %2252 = vmatprep.subr.bf16.mxu0 %v2383_v1  ;;  %2258 = vmatprep.subr.bf16.mxu1 %v2383_v1 }
 0x233   : > { %v1214_v53 = vpop.f32.mrf.mxu0  ;;  %v1260_v54 = vpop.f32.mrf.mxu1 }
 0x234   : > { %v1358_v55 = vsel %vm1173_vm3, %v1214_v53, -inf  ;;  %v1361_v56 = vsel %vm1173_vm3, %v1260_v54, -inf }
 0x235   : > { %1359 = vmax.xlane.f32.xlu0 %v1358_v55  ;;  %v2220_v57 = vpop.f32.mrf.mxu0  ;;  %1362 = vmax.xlane.f32.xlu1 %v1361_v56  ;;  %v2226_v58 = vpop.f32.mrf.mxu1 }
 0x237   : > { %v1217_v59 = vpop.f32.mrf.mxu0  ;;  %v1263_v60 = vpop.f32.mrf.mxu1 }
 0x239   : > { %v2221_v61 = vpop.f32.mrf.mxu0  ;;  %v2227_v62 = vpop.f32.mrf.mxu1 }
 0x23b   : > { %v1306_v63 = vpop.f32.mrf.mxu0  ;;  %v1352_v0 = vpop.f32.mrf.mxu1 }
 0x23c   : > { %v1364_v2 = vsel %vm1173_vm3, %v1306_v63, -inf  ;;  %v1367_v8 = vsel %vm1173_vm3, %v1352_v0, -inf }
 0x23d   : > { %1365 = vmax.xlane.f32.xlu0 %v1364_v2  ;;  %v2232_v3 = vpop.f32.mrf.mxu0  ;;  %v2238_v4 = vpop.f32.mrf.mxu1 }
 0x23f   : > { %v1309_v5 = vpop.f32.mrf.mxu0  ;;  %v1355_v7 = vpop.f32.mrf.mxu1 }
 0x241   : > { %v2233_v9 = vpop.f32.mrf.mxu0  ;;  %1368 = vmax.xlane.f32.xlu0 %v1367_v8  ;;  %v2239_v10 = vpop.f32.mrf.mxu1 }
 0x2be   : > { %v1360_v11 = vpop.xlane.xlu0 %1359  ;;  %v1363_v12 = vpop.xlane.xlu1 %1362 }
 0x2bf   : > { %v1370_v13 = vsub.f32 %v1214_v53, %v1360_v11  ;;  %v1371_v14 = vsub.f32 %v1260_v54, %v1363_v12 }
 0x2c1   : > { %v1374_v15 = vmul.f32 1.442695, %v1370_v13  ;;  %v1376_v16 = vmul.f32 1.442695, %v1371_v14 }
 0x2c3   : > { %2339 = vpow2.f32 %v1374_v15 }
 0x2c4   : > { %2341 = vpow2.f32 %v1376_v16 }
 0x2c6   : > { %v1366_v17 = vpop.xlane.xlu0 %1365 }
 0x2c7   : > { %v1372_v18 = vsub.f32 %v1306_v63, %v1366_v17 }
 0x2c9   : > { %v1378_v19 = vmul.f32 1.442695, %v1372_v18 }
 0x2ca   : > { %v1369_v20 = vpop.xlane.xlu0 %1368 }
 0x2cb   : > { %2343 = vpow2.f32 %v1378_v19  ;;  %v1373_v21 = vsub.f32 %v1352_v0, %v1369_v20  ;;  %v2331_v19 = vld [vmem:[%s2750_s6 + $0x8] sm:$0xff]  }
 0x2cd   : > { %v1380_v22 = vmul.f32 1.442695, %v1373_v21 }
 0x2cf   : > { %2345 = vpow2.f32 %v1380_v22 }
 0x2d0   : > { %v2340_v23 = vpop.eup %2339 }
 0x2d1   : > { %v2342_v25 = vpop.eup %2341  ;;  %v1382_v26 = vsel %vm1173_vm3, %v2340_v23, 0.0  ;;  %v1394_v27 = vpack.c.bf16 %v2340_v23, %v2340_v23 }
 0x2d2   : > { %1383 = vadd.xlane.f32.xlu1 %v1382_v26  ;;  %v1385_v29 = vsel %vm1173_vm3, %v2342_v25, 0.0  ;;  %v1395_v30 = vpack.c.bf16 %v2342_v25, %v2342_v25 }
 0x2d3   : > { %1386 = vadd.xlane.f32.xlu0 %v1385_v29  ;;  %2243 = vmatmul.mubr.msk.bf16.vlgmr.msra.gmra.mxu0 %vm1173_vm3, %v1394_v27 }
 0x2d4   : > { %2249 = vmatmul.mubr.msk.bf16.vlgmr.msra.gmra.mxu1 %vm1173_vm3, %v1395_v30  ;;  %2253 = vmatpush3.bf16.msra.mxu0 %v1499_v32 }
 0x2d5   : > { %2259 = vmatpush3.bf16.msra.mxu1 %v1545_v33  ;;  %2254 = vmatprep.mubr.msk.bf16.mxu0 %vm2384_vm0, %v2383_v1 }
 0x2d6   : > { %2260 = vmatprep.mubr.msk.bf16.mxu1 %vm2384_vm0, %v2383_v1  ;;  %2264 = vmatprep.subr.bf16.mxu0 %v2383_v1 }
 0x2d7   : > { %2272 = vmatprep.subr.bf16.mxu1 %v2383_v1 }
 0x2d8   : > { %v2344_v34 = vpop.eup %2343 }
 0x2d9   : > { %v1388_v35 = vsel %vm1173_vm3, %v2344_v34, 0.0  ;;  %v1396_v36 = vpack.c.bf16 %v2344_v34, %v2344_v34 }
 0x2da   : > { %1389 = vadd.xlane.f32.xlu1 %v1388_v35 }
 0x2db   : > { %2255 = vmatmul.mubr.msk.bf16.vlgmr.msra.gmra.mxu0 %vm1173_vm3, %v1396_v36 }
 0x2dc   : > { %v2346_v38 = vpop.eup %2345  ;;  %2268 = vmatprep.mubr.msk.bf16.mxu0 %vm2384_vm0, %v2383_v1  ;;  %2265 = vmatpush3.bf16.msra.mxu0 %v2331_v19 }
 0x2dd   : > { %v1391_v39 = vsel %vm1173_vm3, %v2346_v38, 0.0  ;;  %v1397_v40 = vpack.c.bf16 %v2346_v38, %v2346_v38  ;;  %2266 = vmatprep.subr.bf16.mxu0 %v2383_v1 }
 0x2de   : > { %1392 = vadd.xlane.f32.xlu0 %v1391_v39 }
 0x2df   : > { %2261 = vmatmul.mubr.msk.bf16.vlgmr.msra.gmra.mxu1 %vm1173_vm3, %v1397_v40 }
 0x2e0   : > { %2276 = vmatprep.mubr.msk.bf16.mxu1 %vm2384_vm0, %v2383_v1  ;;  %2267 = vmatpush3.bf16.msra.mxu0 %v2332_v28 }
 0x2e1   : > { %2280 = vmatprep.subr.bf16.mxu0 %v2383_v1 }
 0x35b   : > { %v1384_v41 = vpop.xlane.xlu1 %1383 }
 0x35c   : > { %v1387_v42 = vpop.xlane.xlu0 %1386 }
 0x363   : > { %v1390_v43 = vpop.xlane.xlu1 %1389 }
 0x364   : > { %2347 = vrcp.f32 %v1390_v43 }
 0x365   : > { %2349 = vrcp.f32 %v1384_v41 }
 0x366   : > { %2351 = vrcp.f32 %v1387_v42 }
 0x367   : > { %v1393_v44 = vpop.xlane.xlu0 %1392 }
 0x368   : > { %2353 = vrcp.f32 %v1393_v44 }
 0x371   : > { %v2348_v53 = vpop.eup %2347 }
 0x372   : > { %v2350_v56 = vpop.eup %2349 }
 0x373   : > { %v2352_v58 = vpop.eup %2351 }
 0x375   : > { %v2354_v60 = vpop.eup %2353 }
 0x393   : > { %v1443_v45 = vpop.f32.mrf.mxu0 }
 0x394   : > { %v1489_v46 = vpop.f32.mrf.mxu1  ;;  %v1591_v59 = vmul.f32 %v2350_v56, %v1443_v45 }
 0x395   : > { %v2244_v47 = vpop.f32.mrf.mxu0  ;;  %v1592_v63 = vmul.f32 %v2352_v58, %v1489_v46 }
 0x396   : > { %v2250_v48 = vpop.f32.mrf.mxu1 }
 0x397   : > { %v1446_v49 = vpop.f32.mrf.mxu0 }
 0x398   : > { %v1492_v50 = vpop.f32.mrf.mxu1 }
 0x399   : > { %v2245_v51 = vpop.f32.mrf.mxu0 }
 0x39a   : > { %v2251_v52 = vpop.f32.mrf.mxu1 }
 0x39b   : > { %v1535_v54 = vpop.f32.mrf.mxu0  ;;  %v2147_v52 = vld [vmem:[%s2751_s7] ss:$0 sm:$0xff] }
 0x39c   : > { %v1593_v55 = vmul.f32 %v2348_v53, %v1535_v54 }
 0x39d   : > { %v2256_v57 = vpop.f32.mrf.mxu0 }
 0x39e   : > { %v1595_v0 = vcombine.low %v1591_v59, %v1593_v55  ;;  %v1596_v2 = vcombine.high %v1591_v59, %v1593_v55 }
 0x39f   : > { %v1538_v61 = vpop.f32.mrf.mxu0  ;;  %v1581_v62 = vpop.f32.mrf.mxu1 }
 0x3a0   : > { %v1594_v3 = vmul.f32 %v2354_v60, %v1581_v62  ;;  %v1603_v10 = vrot.slane %v1595_v0, %v2545_v31  ;;  %v1610_v11 = vrot.slane %v1596_v2, %v2545_v31  ;;  %v2333_v2 = vld [vmem:[%s2754_s10 + $0x8] sm:$0xff]  }
 0x3a1   : > { %v2257_v4 = vpop.f32.mrf.mxu0  ;;  %v2262_v5 = vpop.f32.mrf.mxu1  ;;  %2273 = vmatpush3.bf16.msra.mxu1 %v2333_v2 }
 0x3a2   : > { %v1611_v7 = vcombine.low %v1592_v63, %v1594_v3  ;;  %v1612_v8 = vcombine.high %v1592_v63, %v1594_v3  ;;  %2274 = vmatprep.subr.bf16.mxu1 %v2383_v1  ;;  %v2335_v3 = vld [vmem:[%s2756_s12 + $0x18] sm:$0xff]   ;;  %v2336_v4 = vld [vmem:[%s2756_s12 + $0x10] sm:$0xff]  }
 0x3a3   : > { %v1584_v9 = vpop.f32.mrf.mxu1 }
 0x3a4   : > { %v1619_v12 = vrot.slane %v1611_v7, %v2545_v31  ;;  %v1626_v13 = vrot.slane %v1612_v8, %v2545_v31 }
 0x3a5   : > { %v2263_v14 = vpop.f32.mrf.mxu1 }
 0x3a6   : > { %v1627_v15 = vcombine.low %v1603_v10, %v1619_v12  ;;  %v1628_v16 = vcombine.high %v1603_v10, %v1619_v12  ;;  %v1643_v17 = vcombine.low %v1610_v11, %v1626_v13  ;;  %v1644_v18 = vcombine.high %v1610_v11, %v1626_v13  ;;  %v2151_v10 = vld [vmem:[%s2752_s8] ss:$0 sm:$0xff] }
 0x3a7   : > { %v2152_v12 = vld [vmem:[%s2753_s9] ss:$0 sm:$0xff] }
 0x3a8   : > { %v1635_v20 = vrot.slane %v1627_v15, %v2547_v37  ;;  %v1642_v21 = vrot.slane %v1628_v16, %v2547_v37  ;;  %v1651_v22 = vrot.slane %v1643_v17, %v2547_v37  ;;  %v1658_v23 = vrot.slane %v1644_v18, %v2547_v37  ;;  %v2337_v16 = vld [vmem:[%s2756_s12 + $0x8] sm:$0xff]   ;;  %v2338_v17 = vld [vmem:[%s2756_s12] sm:$0xff]  }
 0x3a9   : > { %v2153_v18 = vld [vmem:[%s2755_s11] ss:$0 sm:$0xff] }
 0x3aa   : > { %v1663_v24 = vcombine.low %v1635_v20, %v1642_v21  ;;  %v2145_v25 = vcombine.high %v1635_v20, %v1642_v21  ;;  %v1679_v26 = vcombine.low %v1651_v22, %v1658_v23  ;;  %v2146_v27 = vcombine.high %v1651_v22, %v1658_v23 }
 0x3ac   : > { %v1670_v29 = vrot.slane %v1663_v24, %v2545_v31  ;;  %v1678_v30 = vrot.slane %v2145_v25, %v2545_v31  ;;  %v1686_v32 = vrot.slane %v1679_v26, %v2545_v31  ;;  %v1694_v33 = vrot.slane %v2146_v27, %v2545_v31 }
 0x3ae   : > { %v1696_v34 = vcombine.high %v1670_v29, %v1678_v30  ;;  %v1712_v35 = vcombine.high %v1686_v32, %v1694_v33  ;;  %v1695_v36 = vcombine.low %v1670_v29, %v1678_v30  ;;  %v1711_v38 = vcombine.low %v1686_v32, %v1694_v33 }
 0x3b0   : > { %v1710_v39 = vrot.slane %v1696_v34, %v2547_v37  ;;  %v1726_v40 = vrot.slane %v1712_v35, %v2547_v37  ;;  %v1703_v41 = vrot.slane %v1695_v36, %v2547_v37  ;;  %v1719_v42 = vrot.slane %v1711_v38, %v2547_v37 }
 0x3b2   : > { %v1729_v43 = vcombine.low %v1710_v39, %v1726_v40  ;;  %v1728_v44 = vcombine.high %v1703_v41, %v1719_v42  ;;  %v1727_v45 = vcombine.low %v1703_v41, %v1719_v42  ;;  %v1730_v31 = vcombine.high %v1710_v39, %v1726_v40 }
 0x3b4   : > { %1736 = vrot.lane.b32.xlu0 %v1729_v43, %s2391_s0  ;;  %1732 = vrot.lane.b32.xlu1 %v1728_v44, %s2392_s17  ;;  %v2163_v44 = vld [vmem:[%s2758_s14] ss:$0 sm:$0xff] }
 0x3b8   : > { %1740 = vrot.lane.b32.xlu1 %v1730_v31, %s2393_s18  ;;  %v2164_v31 = vld [vmem:[%s2759_s15] ss:$0 sm:$0xff] }
 0x426   : > { %v1733_v46 = vpop.permute.xlu1 %1732  ;;  %v1737_v47 = vpop.permute.xlu0 %1736 }
 0x427   : > { %v1743_v48 = vsel %vm1173_vm3, %v1727_v45, %v1733_v46 }
 0x428   : > { %v1745_v50 = vsel %vm1744_vm5, %v1743_v48, %v1737_v47 }
 0x42a   : > { %v1741_v49 = vpop.permute.xlu1 %1740 }
 0x42b   : > { %v1747_v51 = vsel %vm1746_vm6, %v1745_v50, %v1741_v49 }
 0x42c   : > { %v1748_v37 = vpack.c.bf16 %v1747_v51, %v1747_v51 }
 0x42e   : > { %2269 = vmatmul.mubr.msk.bf16.vlgmr.msra.gmra.mxu0 %vm595_vm1, %v1748_v37 }
 0x42f   : > { %2288 = vmatprep.mubr.msk.bf16.mxu0 %vm2384_vm0, %v2383_v1  ;;  %2281 = vmatpush3.bf16.msra.mxu0 %v2335_v3 }
 0x430   : > { %2282 = vmatprep.subr.bf16.mxu0 %v2383_v1 }
 0x433   : > { %2283 = vmatpush3.bf16.msra.mxu0 %v2336_v4 }
 0x434   : > { %2284 = vmatprep.subr.bf16.mxu0 %v2383_v1 }
 0x437   : > { %2285 = vmatpush3.bf16.msra.mxu0 %v2337_v16 }
 0x438   : > { %2286 = vmatprep.subr.bf16.mxu0 %v2383_v1  ;;  %v2157_v1 = vld [vmem:[%s2757_s13] ss:$0 sm:$0xff] }
 0x43b   : > { %2287 = vmatpush3.bf16.msra.mxu0 %v2338_v17 }
 0x4ee   : > { %v1809_v53 = vpop.f32.mrf.mxu0 }
 0x4ef   : > { %v1810_v54 = vadd.f32 %v2147_v52, %v1809_v53 }
 0x4f0   : > { %v2270_v55 = vpop.f32.mrf.mxu0 }
 0x4f1   : > { %v1815_v56 = vadd.f32 %v1810_v54, %v2525_v6  ;;  %v2334_v6 = vld [vmem:[%s2754_s10] sm:$0xff]  }
 0x4f2   : > { %v1812_v57 = vpop.f32.mrf.mxu0  ;;  %2275 = vmatpush3.bf16.msra.mxu1 %v2334_v6 }
 0x4f3   : > { %v1816_v58 = vsel %vm595_vm1, %v1815_v56, 0.0 }
 0x4f4   : > { %1817 = vadd.xlane.f32.xlu1 %v1816_v58  ;;  %v2271_v59 = vpop.f32.mrf.mxu0 }
 0x57d   : > { %v1818_v60 = vpop.xlane.xlu1 %1817 }
 0x57e   : > { %v1820_v61 = vmul.f32 0.03125, %v1818_v60 }
 0x580   : > { %v1821_v62 = vsub.f32 %v1815_v56, %v1820_v61 }
 0x582   : > { %v1822_v63 = vmul.f32 %v1821_v62, %v1821_v62 }
 0x584   : > { %v1823_v0 = vsel %vm595_vm1, %v1822_v63, 0.0 }
 0x585   : > { %1824 = vadd.xlane.f32.xlu0 %v1823_v0 }
 0x60e   : > { %v1825_v5 = vpop.xlane.xlu0 %1824 }
 0x60f   : > { %v1826_v7 = vmul.f32 0.03125, %v1825_v5 }
 0x611   : > { %v1827_v8 = vadd.f32 1e-05, %v1826_v7 }
 0x613   : > { %2355 = vrsqrt.f32 %v1827_v8 }
 0x620   : > { %v2356_v9 = vpop.eup %2355 }
 0x621   : > { %v1829_v11 = vmul.f32 %v2356_v9, %v1821_v62 }
 0x623   : > { %v1837_v13 = vmul.f32 %v2151_v10, %v1829_v11 }
 0x625   : > { %v1845_v14 = vadd.f32 %v2152_v12, %v1837_v13 }
 0x627   : > { %v1846_v15 = vpack.c.bf16 %v1845_v14, %v1845_v14 }
 0x629   : > { %2277 = vmatmul.mubr.msk.bf16.vlgmr.msra.gmra.mxu1 %vm595_vm1, %v1846_v15 }
 0x6e9   : > { %v1907_v19 = vpop.f32.mrf.mxu1 }
 0x6ea   : > { %v1908_v20 = vadd.f32 %v2153_v18, %v1907_v19 }
 0x6eb   : > { %v2278_v21 = vpop.f32.mrf.mxu1 }
 0x6ec   : > { %v1913_v22 = vmax.f32 %v1908_v20, 0.0 }
 0x6ed   : > { %v1910_v23 = vpop.f32.mrf.mxu1 }
 0x6ee   : > { %v1914_v24 = vpack.c.bf16 %v1913_v22, %v1913_v22 }
 0x6ef   : > { %v2279_v25 = vpop.f32.mrf.mxu1 }
 0x6f0   : > { %2289 = vmatmul.mubr.msk.bf16.vlgmr.msra.gmra.mxu0 %vm1954_vm7, %v1914_v24 }
 0x7b0   : > { %v1992_v26 = vpop.f32.mrf.mxu0 }
 0x7b1   : > { %v1993_v27 = vadd.f32 %v2157_v1, %v1992_v26 }
 0x7b2   : > { %v2290_v28 = vpop.f32.mrf.mxu0 }
 0x7b3   : > { %v1998_v29 = vadd.f32 %v1993_v27, %v1845_v14 }
 0x7b4   : > { %v1995_v30 = vpop.f32.mrf.mxu0 }
 0x7b5   : > { %v1999_v32 = vsel %vm595_vm1, %v1998_v29, 0.0 }
 0x7b6   : > { %2000 = vadd.xlane.f32.xlu0 %v1999_v32  ;;  %v2291_v33 = vpop.f32.mrf.mxu0 }
 0x83f   : > { %v2001_v34 = vpop.xlane.xlu0 %2000 }
 0x840   : > { %v2002_v35 = vmul.f32 0.03125, %v2001_v34 }
 0x842   : > { %v2003_v36 = vsub.f32 %v1998_v29, %v2002_v35 }
 0x844   : > { %v2004_v38 = vmul.f32 %v2003_v36, %v2003_v36 }
 0x846   : > { %v2005_v39 = vsel %vm595_vm1, %v2004_v38, 0.0 }
 0x847   : > { %2006 = vadd.xlane.f32.xlu1 %v2005_v39 }
 0x8d0   : > { %v2007_v40 = vpop.xlane.xlu1 %2006 }
 0x8d1   : > { %v2008_v41 = vmul.f32 0.03125, %v2007_v40 }
 0x8d3   : > { %v2009_v42 = vadd.f32 1e-05, %v2008_v41 }
 0x8d5   : > { %2357 = vrsqrt.f32 %v2009_v42 }
 0x8e2   : > { %v2358_v43 = vpop.eup %2357 }
 0x8e3   : > { %v2011_v45 = vmul.f32 %v2358_v43, %v2003_v36 }
 0x8e5   : > { %v2019_v46 = vmul.f32 %v2163_v44, %v2011_v45 }
 0x8e7   : > { %v2027_v47 = vadd.f32 %v2164_v31, %v2019_v46 }
 0x8e9   : > { %2028 = vst.msk [vmem:[%s564_s28] sm:$0xff] %vm595_vm1, %v2027_v47 }
 0x8ea PF: > { %s26_s23 = sadd.s32 1, %s2381_s23   ;;  %s2763_s21 = smov %s2377_s22 }
 0x8eb   : > { %p23_p5 = scmp.ge.s32.totalorder %s26_s23, 4   ;;  %s2764_s22 = smov %s2766_s24 }
 0x8ed   :  { %25 = sbr.rel (!%p23_p5) target bundleno = 2 (0x2), region = 121 }

// kernel: transformer_encoder.3
= control target key start
LH: loop header
LB: loop body
LE: loop exit
PB: predicated region body
PF: predicated region fallthrough
CT: control target
= control target key end

     0   :  { %s2899_s0 = inlined_call_operand.vmem [shape: f32[2,8,32], index: 0, kind: input, shape index: {}, may-alias: {0,1}]   ;;  %s2900_s1 = inlined_call_operand.vmem [shape: f32[2,8,32], index: 1, kind: input, shape index: {}, may-alias: {0,1}]   ;;  %s2901_s2 = inlined_call_operand.vmem [shape: bf16[32,32], index: 2, kind: input, shape index: {}]   ;;  %s2902_s3 = inlined_call_operand.vmem [shape: f32[1,32], index: 3, kind: input, shape index: {}]   ;;  %s2903_s4 = inlined_call_operand.vmem [shape: bf16[32,64], index: 4, kind: input, shape index: {}]   ;;  %s2904_s5 = inlined_call_operand.vmem [shape: f32[1,64], index: 5, kind: input, shape index: {}]   ;;  %s2905_s6 = inlined_call_operand.vmem [shape: bf16[32,32], index: 6, kind: input, shape index: {}]   ;;  %s2906_s7 = inlined_call_operand.vmem [shape: f32[1,32], index: 7, kind: input, shape index: {}]   ;;  %s2907_s8 = inlined_call_operand.vmem [shape: f32[1,32], index: 8, kind: input, shape index: {}]   ;;  %s2908_s9 = inlined_call_operand.vmem [shape: f32[1,32], index: 9, kind: input, shape index: {}]   ;;  %s2909_s10 = inlined_call_operand.vmem [shape: bf16[32,64], index: 10, kind: input, shape index: {}]   ;;  %s2910_s11 = inlined_call_operand.vmem [shape: f32[1,64], index: 11, kind: input, shape index: {}]   ;;  %s2911_s12 = inlined_call_operand.vmem [shape: bf16[64,32], index: 12, kind: input, shape index: {}]   ;;  %s2912_s13 = inlined_call_operand.vmem [shape: f32[1,32], index: 13, kind: input, shape index: {}]   ;;  %s2913_s14 = inlined_call_operand.vmem [shape: f32[1,32], index: 14, kind: input, shape index: {}]   ;;  %s2914_s15 = inlined_call_operand.vmem [shape: f32[1,32], index: 15, kind: input, shape index: {}]   ;;  %s2915_s16 = inlined_call_operand.hbm [shape: f32[2,8,32], index: 16, kind: output, shape index: {}]  }
   0x1   :  { %2920 = sst [smem:[#allocation12_spill]] %s2899_s0 }
   0x2   :  { %2921 = sst [smem:[#allocation13_spill]] %s2900_s1 }
   0x3   :  { %2922 = sst [smem:[#allocation14_spill]] %s2901_s2 }
   0x4   :  { %2923 = sst [smem:[#allocation15_spill]] %s2903_s4 }
   0x5   :  { %21 = vsyncpa [#allocation5], 0 }
   0x6   :  { %23 = vsyncpa [#allocation5 + $0x1], 0  ;;  %s2573_s21 = smov 0   ;;  %s2575_s22 = smov 0  }
   0x7   :  { %s2577_s23 = smov 0   ;;  %s2579_s24 = smov 0  }
   0x8   :  { %s2581_s25 = smov 0   ;;  %s2583_s26 = smov 0  }
   0x9 LB: > { %2924 = sst [smem:[#allocation7_spill]] %s2462_s23  ;;  %s2121_s27 = sadd.s32 4294967295, %s2474_s26   ;;  %s2474_s26 = sphi %s2583_s26, %s29_s26   ;;  %s2470_s25 = sphi %s2581_s25, %s2939_s25   ;;  %s2466_s24 = sphi %s2579_s24, %s2938_s24   ;;  %s2462_s23 = sphi %s2577_s23, %s2937_s23   ;;  %s2458_s22 = sphi %s2575_s22, %s2941_s22   ;;  %s2454_s21 = sphi %s2573_s21, %s2940_s21  }
   0xa   : > { %2925 = sst [smem:[#allocation8_spill]] %s2470_s25  ;;  %s2122_s28 = sadd.s32 4294967294, %s2474_s26  }
   0xb   : > { %s41_s29 = sadd.s32 1, %s2470_s25  ;;  %s398_s30 = sadd.s32 1, %s2462_s23 }
   0xc   : > { %p43_p0 = scmp.ge.s32.totalorder %s41_s29, 2  ;;  %p408_p1 = scmp.ne.s32.totalorder %s2462_s23, %s2458_s22 }
   0xd   : > { %p409_p2 = scmp.eq.s32.totalorder %s2121_s27, 1  ;;  %p414_p3 = scmp.ne.s32.totalorder %s2458_s22, %s2454_s21 }
   0xe   : > { %s2943_s29 = smov (%p43_p0, %s41_s29), 0  ;;  %p415_p5 = scmp.eq.s32.totalorder %s2122_s28, 1 }
   0xf   : > { %2926 = sst [smem:[#allocation9_spill]] %s2943_s29  ;;  %p2613_p4 = por %p409_p2, %p408_p1 }
  0x10   : > { %s393_s17 = ssub.s32 %s2470_s25, %s2943_s29  ;;  %p2125_p6 = scmp.ge.s32.totalorder %s2474_s26, 1 }
  0x11   : > { %p396_p7 = scmp.eq.s32.totalorder %s393_s17, 0  ;;  %p2620_p8 = por %p415_p5, %p414_p3 }
  0x12   : > { %p492_p9 = scmp.lt.s32.totalorder %s2474_s26, 3 }
  0x13   : > { %s2928_s18 = scalar_select %p2620_p8, 1, 0 }
  0x14   : > { %s2626_s19 = scalar_select %p396_p7, %s2462_s23, %s398_s30  }
  0x15   : > { %2929 = sst [smem:[#allocation10_spill]] %s2928_s18  ;;  %p493_p10 = pnand %p2125_p6, %p492_p9 }
  0x16   : > { %2930 = sst [smem:[#allocation11_spill]] %s2626_s19  ;;  %p548_p11 = scmp.lt.s32.totalorder (!%p493_p10), %s2466_s24, 1 }
  0x17   : > { %496 = sbr.rel (%p493_p10) target bundleno = 2310 (0x906), region = 84  ;;  %s2931_s4 = sld [smem:[#allocation15_spill]] (!%p493_p10) }
  0x18   : > { %s2932_s25 = sld [smem:[#allocation12_spill]] (!%p493_p10)  ;;  %s2480_s27 = smov (!%p493_p10), 112  }
  0x19   : > { %s2933_s2 = sld [smem:[#allocation14_spill]] (!%p493_p10)  ;;  %s2481_s28 = smov (!%p493_p10), 96  }
  0x1a   : > { %s2934_s1 = sld [smem:[#allocation13_spill]] (!%p493_p10)  ;;  %s2484_s23 = smov (!%p493_p10), 16  }
  0x1c   : > { %v2476_v1 = vmov 0.0   ;;  %vm2477_vm0 = vmmov 0   ;;  %s549_s30 = scalar_select %p548_p11, %s2466_s24, 1  ;;  %vm589_vm1 = vcmask 261120   ;;  %v2129_v9 = vld [vmem:[%s2904_s5] ss:$0 sm:$0xff]  ;;  %v648_v23 = vlaneseq }
  0x1d   : > { %v2366_v0 = vld [vmem:[%s2931_s4 + $0x8] sm:$0xff]   ;;  %2208 = vmatprep.subr.bf16.mxu1 %v2476_v1  ;;  %2224 = vmatprep.subr.bf16.mxu0 %v2476_v1  ;;  %v2367_v2 = vld [vmem:[%s2931_s4] sm:$0xff]   ;;  %v2482_v21 = vmov 1983009808   ;;  %v2483_v24 = vmov 1934713408  }
  0x1e   : > { %2209 = vmatpush3.bf16.msra.mxu1 %v2366_v0  ;;  %2212 = vmatprep.mubr.msk.bf16.mxu1 %vm2477_vm0, %v2476_v1  ;;  %s2127_s20 = sshll.u32 %s549_s30, 3  ;;  %v2137_v15 = vld [vmem:[%s2902_s3] ss:$0 sm:$0xff]  ;;  %v646_v22 = vunpack.c.l.s4 %v2482_v21  ;;  %v678_v25 = vunpack.c.l.s4 %v2483_v24  ;;  %v649_v27 = vshrl.u32 %v648_v23, 7  ;;  %vm783_vm2 = vcmask 60416   ;;  %s545_s30 = sand.u32 1, %s2458_s22  }
  0x1f   : > { %2210 = vmatprep.subr.bf16.mxu1 %v2476_v1  ;;  %2226 = vmatprep.mubr.msk.bf16.mxu0 %vm2477_vm0, %v2476_v1  ;;  %s551_s19 = scalar_lea.vmem %s2932_s25, %s2127_s20  ;;  %v2368_v4 = vld [vmem:[%s2933_s2 + $0x8] sm:$0xff]   ;;  %v2369_v7 = vld [vmem:[%s2933_s2] sm:$0xff]   ;;  %vm1167_vm3 = vcmask 64512   ;;  %vm1399_vm4 = vcmask 1043456   ;;  %vm1738_vm5 = vcmask 130048   ;;  %vm1740_vm6 = vcmask 195584  }
  0x20   : > { %v564_v3 = vld [vmem:[%s551_s19] sm:$0xff]  ;;  %s558_s18 = scalar_lea.vmem %s2934_s1, %s2127_s20  ;;  %s2479_s19 = smov 120   ;;  %v647_v26 = vunpack.c.0.s8 %v646_v22  ;;  %v679_v30 = vunpack.c.0.s8 %v678_v25  ;;  %vm1948_vm7 = vcmask 523264  }
  0x21   : > { %v565_v5 = vpack.c.bf16 %v564_v3, %v564_v3  ;;  %v2654_v6 = vld [vmem:[%s558_s18] sm:$0xff]  ;;  %s2478_s18 = smov 104   ;;  %s2126_s20 = sshll.u32 %s545_s30, 3 }
  0x22   : > { %2211 = vmatpush3.bf16.msra.mxu1 %v2367_v2  ;;  %v945_v8 = vpack.c.bf16 %v2654_v6, %v2654_v6  ;;  %v2674_v31 = vsub.s32 %v647_v26, %v649_v27  ;;  %v2676_v37 = vsub.s32 %v679_v30, %v649_v27  ;;  %s2172_s25 = sshll.u32 %s2466_s24, 7  ;;  %s547_s4 = scalar_lea.vmem [#allocation4], %s2126_s20 }
  0x23   : > { %2216 = vmatprep.subr.bf16.mxu1 %v2476_v1  ;;  %s2036_s1 = scalar_lea.hbm %s2915_s16, %s2172_s25  ;;  %s2024_s2 = scalar_lea.sflag [#allocation5], %s545_s30 }
  0x25   : > { %2213 = vmatmul.mubr.msk.bf16.vlgmr.msra.gmra.mxu1 %vm589_vm1, %v565_v5 }
  0x26   : > { %2217 = vmatpush3.bf16.msra.mxu1 %v2368_v4  ;;  %2220 = vmatprep.mubr.msk.bf16.mxu1 %vm2477_vm0, %v2476_v1 }
  0x27   : > { %2218 = vmatprep.subr.bf16.mxu1 %v2476_v1 }
  0x2a   : > { %2219 = vmatpush3.bf16.msra.mxu1 %v2369_v7 }
  0x2b   : > { %2230 = vmatprep.subr.bf16.mxu1 %v2476_v1 }
  0x2d   : > { %2221 = vmatmul.mubr.msk.bf16.vlgmr.msra.gmra.mxu1 %vm589_vm1, %v945_v8 }
  0x2e   : > { %2232 = vmatprep.mubr.msk.bf16.mxu1 %vm2477_vm0, %v2476_v1 }
  0xe5   : > { %v627_v10 = vpop.f32.mrf.mxu1 }
  0xe6   : > { %v628_v11 = vadd.f32 %v2129_v9, %v627_v10 }
  0xe7   : > { %v2214_v12 = vpop.f32.mrf.mxu1 }
  0xe8   : > { %640 = vrot.lane.b32.xlu1 %v628_v11, %s2478_s18  ;;  %634 = vrot.lane.b32.xlu0 %v628_v11, %s2479_s19 }
  0xe9   : > { %v630_v13 = vpop.f32.mrf.mxu1 }
  0xeb   : > { %v2215_v14 = vpop.f32.mrf.mxu1 }
  0xec   : > { %637 = vrot.lane.b32.xlu0 %v628_v11, %s2480_s27 }
  0xed   : > { %v1007_v16 = vpop.f32.mrf.mxu1 }
  0xee   : > { %v1008_v17 = vadd.f32 %v2137_v15, %v1007_v16 }
  0xef   : > { %v2222_v18 = vpop.f32.mrf.mxu1 }
  0xf0   : > { %1017 = vrot.lane.b32.xlu0 %v1008_v17, %s2480_s27  ;;  %1014 = vrot.lane.b32.xlu1 %v1008_v17, %s2479_s19  ;;  %s2486_s19 = smov 24  }
  0xf1   : > { %v1010_v19 = vpop.f32.mrf.mxu1 }
  0xf3   : > { %v2223_v20 = vpop.f32.mrf.mxu1 }
  0xf4   : > { %788 = vrot.lane.b32.xlu0 %v628_v11, %s2481_s28  ;;  %1020 = vrot.lane.b32.xlu1 %v1008_v17, %s2478_s18  ;;  %s2485_s18 = smov 8  }
 0x15a   : > { %v641_v28 = vpop.permute.xlu1 %640  ;;  %v635_v29 = vpop.permute.xlu0 %634 }
 0x15b   : > { %790 = vrot.lane.b32.xlu1 %v635_v29, %s2481_s28  ;;  %v659_v32 = vcombine.low %v635_v29, %v641_v28  ;;  %v660_v33 = vcombine.high %v635_v29, %v641_v28 }
 0x15d   : > { %v667_v38 = vrot.slane %v659_v32, %v2674_v31  ;;  %v674_v39 = vrot.slane %v660_v33, %v2674_v31 }
 0x15e   : > { %v638_v34 = vpop.permute.xlu0 %637 }
 0x15f   : > { %v643_v35 = vcombine.low %v628_v11, %v638_v34  ;;  %v644_v36 = vcombine.high %v628_v11, %v638_v34  ;;  %792 = vrot.lane.b32.xlu0 %v638_v34, %s2481_s28  ;;  %794 = vrot.lane.b32.xlu1 %v641_v28, %s2481_s28  ;;  %s2487_s28 = smov [#allocation4]  }
 0x160   : > { %s2402_s17 = sshll.u32 %s2487_s28, 4  ;;  %s2403_s17 = int_to_ptr.vmem [resolvable:$false] %s2402_s17 }
 0x161   : > { %v651_v40 = vrot.slane %v643_v35, %v2674_v31  ;;  %v658_v41 = vrot.slane %v644_v36, %v2674_v31  ;;  %s2404_s24 = scalar_lea.vmem %s2403_s17, 256 }
 0x162   : > { %v1015_v42 = vpop.permute.xlu1 %1014  ;;  %v1018_v47 = vpop.permute.xlu0 %1017 }
 0x163   : > { %v675_v43 = vcombine.low %v651_v40, %v667_v38  ;;  %v676_v44 = vcombine.high %v651_v40, %v667_v38  ;;  %v691_v45 = vcombine.low %v658_v41, %v674_v39  ;;  %v692_v46 = vcombine.high %v658_v41, %v674_v39 }
 0x164   : > { %v1023_v52 = vcombine.low %v1008_v17, %v1018_v47  ;;  %v1024_v53 = vcombine.high %v1008_v17, %v1018_v47 }
 0x165   : > { %v683_v48 = vrot.slane %v675_v43, %v2676_v37  ;;  %v690_v49 = vrot.slane %v676_v44, %v2676_v37  ;;  %v699_v50 = vrot.slane %v691_v45, %v2676_v37  ;;  %v706_v51 = vrot.slane %v692_v46, %v2676_v37 }
 0x166   : > { %v1021_v54 = vpop.permute.xlu1 %1020  ;;  %v1031_v2 = vrot.slane %v1023_v52, %v2674_v31  ;;  %v1038_v3 = vrot.slane %v1024_v53, %v2674_v31 }
 0x167   : > { %v711_v55 = vcombine.low %v683_v48, %v690_v49  ;;  %v2133_v56 = vcombine.high %v683_v48, %v690_v49  ;;  %v727_v57 = vcombine.low %v699_v50, %v706_v51  ;;  %v2134_v58 = vcombine.high %v699_v50, %v706_v51 }
 0x168   : > { %v1039_v59 = vcombine.low %v1015_v42, %v1021_v54  ;;  %v1040_v60 = vcombine.high %v1015_v42, %v1021_v54 }
 0x169   : > { %v718_v61 = vrot.slane %v711_v55, %v2674_v31  ;;  %v726_v62 = vrot.slane %v2133_v56, %v2674_v31  ;;  %v734_v63 = vrot.slane %v727_v57, %v2674_v31  ;;  %v742_v0 = vrot.slane %v2134_v58, %v2674_v31 }
 0x16a   : > { %v1047_v4 = vrot.slane %v1039_v59, %v2674_v31  ;;  %v1054_v5 = vrot.slane %v1040_v60, %v2674_v31 }
 0x16b   : > { %v743_v7 = vcombine.low %v718_v61, %v726_v62  ;;  %v744_v8 = vcombine.high %v718_v61, %v726_v62  ;;  %v759_v9 = vcombine.low %v734_v63, %v742_v0  ;;  %v760_v10 = vcombine.high %v734_v63, %v742_v0 }
 0x16c   : > { %v1055_v11 = vcombine.low %v1031_v2, %v1047_v4  ;;  %v1056_v12 = vcombine.high %v1031_v2, %v1047_v4  ;;  %v1071_v13 = vcombine.low %v1038_v3, %v1054_v5  ;;  %v1072_v14 = vcombine.high %v1038_v3, %v1054_v5  ;;  %v789_v2 = vpop.permute.xlu0 %788 }
 0x16d   : > { %v751_v15 = vrot.slane %v743_v7, %v2676_v37  ;;  %v758_v16 = vrot.slane %v744_v8, %v2676_v37  ;;  %v767_v17 = vrot.slane %v759_v9, %v2676_v37  ;;  %v774_v18 = vrot.slane %v760_v10, %v2676_v37 }
 0x16e   : > { %v1063_v19 = vrot.slane %v1055_v11, %v2676_v37  ;;  %v1070_v20 = vrot.slane %v1056_v12, %v2676_v37  ;;  %v1079_v21 = vrot.slane %v1071_v13, %v2676_v37  ;;  %v1086_v22 = vrot.slane %v1072_v14, %v2676_v37 }
 0x16f   : > { %v775_v23 = vcombine.low %v751_v15, %v767_v17  ;;  %v776_v24 = vcombine.high %v751_v15, %v767_v17  ;;  %v777_v25 = vcombine.low %v758_v16, %v774_v18  ;;  %v778_v26 = vcombine.high %v758_v16, %v774_v18 }
 0x170   : > { %v1091_v27 = vcombine.low %v1063_v19, %v1070_v20  ;;  %v2141_v28 = vcombine.high %v1063_v19, %v1070_v20  ;;  %v1107_v29 = vcombine.low %v1079_v21, %v1086_v22  ;;  %v2142_v30 = vcombine.high %v1079_v21, %v1086_v22 }
 0x171   : > { %v779_v32 = vpack.c.bf16 %v775_v23, %v775_v23  ;;  %v780_v33 = vpack.c.bf16 %v776_v24, %v776_v24  ;;  %v781_v34 = vpack.c.bf16 %v777_v25, %v777_v25  ;;  %v782_v35 = vpack.c.bf16 %v778_v26, %v778_v26 }
 0x172   : > { %v1098_v36 = vrot.slane %v1091_v27, %v2674_v31  ;;  %v1106_v38 = vrot.slane %v2141_v28, %v2674_v31  ;;  %v1114_v39 = vrot.slane %v1107_v29, %v2674_v31  ;;  %v1122_v40 = vrot.slane %v2142_v30, %v2674_v31 }
 0x173   : > { %784 = vst.msk [vmem:[#allocation2] sm:$0xf] %vm783_vm2, %v779_v32  ;;  %785 = vst.msk [vmem:[#allocation2 + $0x4] sm:$0xf] %vm783_vm2, %v780_v33 }
 0x174   : > { %786 = vst.msk [vmem:[#allocation2 + $0x8] sm:$0xf] %vm783_vm2, %v781_v34  ;;  %787 = vst.msk [vmem:[#allocation2 + $0xc] sm:$0xf] %vm783_vm2, %v782_v35  ;;  %v1123_v41 = vcombine.low %v1098_v36, %v1106_v38  ;;  %v1139_v42 = vcombine.low %v1114_v39, %v1122_v40  ;;  %v1124_v49 = vcombine.high %v1098_v36, %v1106_v38 }
 0x175   : > { %v1140_v50 = vcombine.high %v1114_v39, %v1122_v40 }
 0x176   : > { %v1131_v43 = vrot.slane %v1123_v41, %v2676_v37  ;;  %v1147_v44 = vrot.slane %v1139_v42, %v2676_v37  ;;  %v1138_v57 = vrot.slane %v1124_v49, %v2676_v37 }
 0x177   : > { %v1154_v58 = vrot.slane %v1140_v50, %v2676_v37 }
 0x178   : > { %v1155_v51 = vcombine.low %v1131_v43, %v1147_v44  ;;  %v1156_v52 = vcombine.high %v1131_v43, %v1147_v44 }
 0x179   : > { %v1157_v61 = vcombine.low %v1138_v57, %v1154_v58  ;;  %v1158_v62 = vcombine.high %v1138_v57, %v1154_v58 }
 0x17a   : > { %v1163_v45 = vld [vmem:[#allocation2] sm:$0xf]  ;;  %v1164_v46 = vld [vmem:[#allocation2 + $0x4] sm:$0xf]  ;;  %v1159_v55 = vpack.c.bf16 %v1155_v51, %v1155_v51  ;;  %v1160_v56 = vpack.c.bf16 %v1156_v52, %v1156_v52 }
 0x17b   : > { %v1172_v47 = vsel %vm1167_vm3, %v1163_v45, 0  ;;  %v1218_v48 = vsel %vm1167_vm3, %v1164_v46, 0  ;;  %v1165_v53 = vld [vmem:[#allocation2 + $0x8] sm:$0xf]  ;;  %v1166_v54 = vld [vmem:[#allocation2 + $0xc] sm:$0xf]  ;;  %v1161_v63 = vpack.c.bf16 %v1157_v61, %v1157_v61  ;;  %v1162_v0 = vpack.c.bf16 %v1158_v62, %v1158_v62 }
 0x17c   : > { %2225 = vmatpush3.bf16.xpose.msra.mxu0 %v1172_v47  ;;  %2231 = vmatpush3.bf16.xpose.msra.mxu1 %v1218_v48  ;;  %v1264_v59 = vsel %vm1167_vm3, %v1165_v53, 0  ;;  %v1310_v60 = vsel %vm1167_vm3, %v1166_v54, 0 }
 0x17d   : > { %2236 = vmatprep.subr.bf16.mxu0 %v2476_v1  ;;  %2242 = vmatprep.subr.bf16.mxu1 %v2476_v1 }
 0x183   : > { %2227 = vmatmul.mubr.msk.bf16.vlgmr.msra.gmra.mxu0 %vm1167_vm3, %v1159_v55  ;;  %2233 = vmatmul.mubr.msk.bf16.vlgmr.msra.gmra.mxu1 %vm1167_vm3, %v1160_v56 }
 0x184   : > { %2237 = vmatpush3.bf16.xpose.msra.mxu0 %v1264_v59  ;;  %2243 = vmatpush3.bf16.xpose.msra.mxu1 %v1310_v60 }
 0x185   : > { %2238 = vmatprep.mubr.msk.bf16.mxu0 %vm2477_vm0, %v2476_v1  ;;  %2244 = vmatprep.mubr.msk.bf16.mxu1 %vm2477_vm0, %v2476_v1 }
 0x186   : > { %2248 = vmatprep.subr.bf16.mxu0 %v2476_v1  ;;  %2254 = vmatprep.subr.bf16.mxu1 %v2476_v1 }
 0x18b   : > { %2239 = vmatmul.mubr.msk.bf16.vlgmr.msra.gmra.mxu0 %vm1167_vm3, %v1161_v63  ;;  %2245 = vmatmul.mubr.msk.bf16.vlgmr.msra.gmra.mxu1 %vm1167_vm3, %v1162_v0 }
 0x18c   : > { %2250 = vmatprep.mubr.msk.bf16.mxu0 %vm2477_vm0, %v2476_v1  ;;  %2256 = vmatprep.mubr.msk.bf16.mxu1 %vm2477_vm0, %v2476_v1 }
 0x1cd   : > { %v791_v3 = vpop.permute.xlu1 %790 }
 0x1d1   : > { %v793_v4 = vpop.permute.xlu0 %792  ;;  %v795_v5 = vpop.permute.xlu1 %794 }
 0x1d2   : > { %v800_v7 = vcombine.low %v789_v2, %v793_v4  ;;  %v801_v8 = vcombine.high %v789_v2, %v793_v4  ;;  %v816_v9 = vcombine.low %v791_v3, %v795_v5  ;;  %v817_v10 = vcombine.high %v791_v3, %v795_v5 }
 0x1d4   : > { %v808_v11 = vrot.slane %v800_v7, %v2674_v31  ;;  %v815_v12 = vrot.slane %v801_v8, %v2674_v31  ;;  %v824_v13 = vrot.slane %v816_v9, %v2674_v31  ;;  %v831_v14 = vrot.slane %v817_v10, %v2674_v31 }
 0x1d6   : > { %v832_v15 = vcombine.low %v808_v11, %v824_v13  ;;  %v833_v16 = vcombine.high %v808_v11, %v824_v13  ;;  %v848_v17 = vcombine.low %v815_v12, %v831_v14  ;;  %v849_v18 = vcombine.high %v815_v12, %v831_v14 }
 0x1d8   : > { %v840_v19 = vrot.slane %v832_v15, %v2676_v37  ;;  %v847_v20 = vrot.slane %v833_v16, %v2676_v37  ;;  %v856_v21 = vrot.slane %v848_v17, %v2676_v37  ;;  %v863_v22 = vrot.slane %v849_v18, %v2676_v37 }
 0x1da   : > { %v868_v23 = vcombine.low %v840_v19, %v847_v20  ;;  %v2135_v24 = vcombine.high %v840_v19, %v847_v20  ;;  %v884_v25 = vcombine.low %v856_v21, %v863_v22  ;;  %v2136_v26 = vcombine.high %v856_v21, %v863_v22 }
 0x1dc   : > { %v875_v27 = vrot.slane %v868_v23, %v2674_v31  ;;  %v883_v28 = vrot.slane %v2135_v24, %v2674_v31  ;;  %v891_v29 = vrot.slane %v884_v25, %v2674_v31  ;;  %v899_v30 = vrot.slane %v2136_v26, %v2674_v31 }
 0x1de   : > { %v900_v32 = vcombine.low %v875_v27, %v883_v28  ;;  %v901_v33 = vcombine.high %v875_v27, %v883_v28  ;;  %v916_v34 = vcombine.low %v891_v29, %v899_v30  ;;  %v917_v35 = vcombine.high %v891_v29, %v899_v30 }
 0x1e0   : > { %v908_v36 = vrot.slane %v900_v32, %v2676_v37  ;;  %v915_v38 = vrot.slane %v901_v33, %v2676_v37  ;;  %v924_v39 = vrot.slane %v916_v34, %v2676_v37  ;;  %v931_v40 = vrot.slane %v917_v35, %v2676_v37 }
 0x1e2   : > { %v932_v41 = vcombine.low %v908_v36, %v924_v39  ;;  %v933_v42 = vcombine.high %v908_v36, %v924_v39  ;;  %v934_v43 = vcombine.low %v915_v38, %v931_v40  ;;  %v935_v44 = vcombine.high %v915_v38, %v931_v40 }
 0x1e4   : > { %v936_v45 = vpack.c.bf16 %v932_v41, %v932_v41  ;;  %v937_v46 = vpack.c.bf16 %v933_v42, %v933_v42  ;;  %v938_v47 = vpack.c.bf16 %v934_v43, %v934_v43  ;;  %v939_v48 = vpack.c.bf16 %v935_v44, %v935_v44 }
 0x1e6   : > { %940 = vst.msk [vmem:[#allocation3] sm:$0xf] %vm783_vm2, %v936_v45  ;;  %941 = vst.msk [vmem:[#allocation3 + $0x4] sm:$0xf] %vm783_vm2, %v937_v46 }
 0x1e7   : > { %942 = vst.msk [vmem:[#allocation3 + $0x8] sm:$0xf] %vm783_vm2, %v938_v47  ;;  %943 = vst.msk [vmem:[#allocation3 + $0xc] sm:$0xf] %vm783_vm2, %v939_v48 }
 0x1ed   : > { %v1392_v49 = vld [vmem:[#allocation3] sm:$0xf]  ;;  %v1393_v50 = vld [vmem:[#allocation3 + $0x4] sm:$0xf] }
 0x1ee   : > { %v1401_v51 = vsel %vm1399_vm4, %v1392_v49, 0  ;;  %v1447_v52 = vsel %vm1399_vm4, %v1393_v50, 0  ;;  %v1394_v24 = vld [vmem:[#allocation3 + $0x8] sm:$0xf]  ;;  %v1395_v28 = vld [vmem:[#allocation3 + $0xc] sm:$0xf] }
 0x1ef   : > { %2249 = vmatpush3.bf16.msra.mxu0 %v1401_v51  ;;  %2255 = vmatpush3.bf16.msra.mxu1 %v1447_v52  ;;  %v1493_v32 = vsel %vm1399_vm4, %v1394_v24, 0  ;;  %v1539_v33 = vsel %vm1399_vm4, %v1395_v28, 0  ;;  %v2371_v28 = vld [vmem:[%s2905_s6] sm:$0xff]  }
 0x1f0   : > { %2260 = vmatprep.subr.bf16.mxu0 %v2476_v1  ;;  %2266 = vmatprep.subr.bf16.mxu1 %v2476_v1 }
 0x243   : > { %v1208_v53 = vpop.f32.mrf.mxu0  ;;  %v1254_v54 = vpop.f32.mrf.mxu1 }
 0x244   : > { %v1352_v55 = vsel %vm1167_vm3, %v1208_v53, -inf  ;;  %v1355_v56 = vsel %vm1167_vm3, %v1254_v54, -inf }
 0x245   : > { %1353 = vmax.xlane.f32.xlu0 %v1352_v55  ;;  %v2228_v57 = vpop.f32.mrf.mxu0  ;;  %1356 = vmax.xlane.f32.xlu1 %v1355_v56  ;;  %v2234_v58 = vpop.f32.mrf.mxu1 }
 0x247   : > { %v1211_v59 = vpop.f32.mrf.mxu0  ;;  %v1257_v60 = vpop.f32.mrf.mxu1 }
 0x249   : > { %v2229_v61 = vpop.f32.mrf.mxu0  ;;  %v2235_v62 = vpop.f32.mrf.mxu1 }
 0x24b   : > { %v1300_v63 = vpop.f32.mrf.mxu0  ;;  %v1346_v0 = vpop.f32.mrf.mxu1 }
 0x24c   : > { %v1358_v2 = vsel %vm1167_vm3, %v1300_v63, -inf  ;;  %v1361_v8 = vsel %vm1167_vm3, %v1346_v0, -inf }
 0x24d   : > { %1359 = vmax.xlane.f32.xlu0 %v1358_v2  ;;  %v2240_v3 = vpop.f32.mrf.mxu0  ;;  %v2246_v4 = vpop.f32.mrf.mxu1 }
 0x24f   : > { %v1303_v5 = vpop.f32.mrf.mxu0  ;;  %v1349_v7 = vpop.f32.mrf.mxu1 }
 0x251   : > { %v2241_v9 = vpop.f32.mrf.mxu0  ;;  %1362 = vmax.xlane.f32.xlu0 %v1361_v8  ;;  %v2247_v10 = vpop.f32.mrf.mxu1 }
 0x2ce   : > { %v1354_v11 = vpop.xlane.xlu0 %1353  ;;  %v1357_v12 = vpop.xlane.xlu1 %1356 }
 0x2cf   : > { %v1364_v13 = vsub.f32 %v1208_v53, %v1354_v11  ;;  %v1365_v14 = vsub.f32 %v1254_v54, %v1357_v12 }
 0x2d1   : > { %v1368_v15 = vmul.f32 1.442695, %v1364_v13  ;;  %v1370_v16 = vmul.f32 1.442695, %v1365_v14 }
 0x2d3   : > { %2378 = vpow2.f32 %v1368_v15 }
 0x2d4   : > { %2380 = vpow2.f32 %v1370_v16 }
 0x2d6   : > { %v1360_v17 = vpop.xlane.xlu0 %1359 }
 0x2d7   : > { %v1366_v18 = vsub.f32 %v1300_v63, %v1360_v17 }
 0x2d9   : > { %v1372_v19 = vmul.f32 1.442695, %v1366_v18 }
 0x2da   : > { %v1363_v20 = vpop.xlane.xlu0 %1362 }
 0x2db   : > { %2382 = vpow2.f32 %v1372_v19  ;;  %v1367_v21 = vsub.f32 %v1346_v0, %v1363_v20  ;;  %v2370_v19 = vld [vmem:[%s2905_s6 + $0x8] sm:$0xff]  }
 0x2dd   : > { %v1374_v22 = vmul.f32 1.442695, %v1367_v21 }
 0x2df   : > { %2384 = vpow2.f32 %v1374_v22 }
 0x2e0   : > { %v2379_v23 = vpop.eup %2378 }
 0x2e1   : > { %v2381_v25 = vpop.eup %2380  ;;  %v1376_v26 = vsel %vm1167_vm3, %v2379_v23, 0.0  ;;  %v1388_v27 = vpack.c.bf16 %v2379_v23, %v2379_v23 }
 0x2e2   : > { %1377 = vadd.xlane.f32.xlu1 %v1376_v26  ;;  %v1379_v29 = vsel %vm1167_vm3, %v2381_v25, 0.0  ;;  %v1389_v30 = vpack.c.bf16 %v2381_v25, %v2381_v25 }
 0x2e3   : > { %1380 = vadd.xlane.f32.xlu0 %v1379_v29  ;;  %2251 = vmatmul.mubr.msk.bf16.vlgmr.msra.gmra.mxu0 %vm1167_vm3, %v1388_v27 }
 0x2e4   : > { %2257 = vmatmul.mubr.msk.bf16.vlgmr.msra.gmra.mxu1 %vm1167_vm3, %v1389_v30  ;;  %2261 = vmatpush3.bf16.msra.mxu0 %v1493_v32 }
 0x2e5   : > { %2267 = vmatpush3.bf16.msra.mxu1 %v1539_v33  ;;  %2262 = vmatprep.mubr.msk.bf16.mxu0 %vm2477_vm0, %v2476_v1 }
 0x2e6   : > { %2268 = vmatprep.mubr.msk.bf16.mxu1 %vm2477_vm0, %v2476_v1  ;;  %2272 = vmatprep.subr.bf16.mxu0 %v2476_v1 }
 0x2e7   : > { %2280 = vmatprep.subr.bf16.mxu1 %v2476_v1 }
 0x2e8   : > { %v2383_v34 = vpop.eup %2382 }
 0x2e9   : > { %v1382_v35 = vsel %vm1167_vm3, %v2383_v34, 0.0  ;;  %v1390_v36 = vpack.c.bf16 %v2383_v34, %v2383_v34 }
 0x2ea   : > { %1383 = vadd.xlane.f32.xlu1 %v1382_v35 }
 0x2eb   : > { %2263 = vmatmul.mubr.msk.bf16.vlgmr.msra.gmra.mxu0 %vm1167_vm3, %v1390_v36 }
 0x2ec   : > { %v2385_v38 = vpop.eup %2384  ;;  %2276 = vmatprep.mubr.msk.bf16.mxu0 %vm2477_vm0, %v2476_v1  ;;  %2273 = vmatpush3.bf16.msra.mxu0 %v2370_v19 }
 0x2ed   : > { %v1385_v39 = vsel %vm1167_vm3, %v2385_v38, 0.0  ;;  %v1391_v40 = vpack.c.bf16 %v2385_v38, %v2385_v38  ;;  %2274 = vmatprep.subr.bf16.mxu0 %v2476_v1 }
 0x2ee   : > { %1386 = vadd.xlane.f32.xlu0 %v1385_v39 }
 0x2ef   : > { %2269 = vmatmul.mubr.msk.bf16.vlgmr.msra.gmra.mxu1 %vm1167_vm3, %v1391_v40 }
 0x2f0   : > { %2284 = vmatprep.mubr.msk.bf16.mxu1 %vm2477_vm0, %v2476_v1  ;;  %2275 = vmatpush3.bf16.msra.mxu0 %v2371_v28 }
 0x2f1   : > { %2288 = vmatprep.subr.bf16.mxu0 %v2476_v1 }
 0x36b   : > { %v1378_v41 = vpop.xlane.xlu1 %1377 }
 0x36c   : > { %v1381_v42 = vpop.xlane.xlu0 %1380 }
 0x373   : > { %v1384_v43 = vpop.xlane.xlu1 %1383 }
 0x374   : > { %2386 = vrcp.f32 %v1384_v43 }
 0x375   : > { %2388 = vrcp.f32 %v1378_v41 }
 0x376   : > { %2390 = vrcp.f32 %v1381_v42 }
 0x377   : > { %v1387_v44 = vpop.xlane.xlu0 %1386 }
 0x378   : > { %2392 = vrcp.f32 %v1387_v44 }
 0x381   : > { %v2387_v53 = vpop.eup %2386 }
 0x382   : > { %v2389_v56 = vpop.eup %2388 }
 0x383   : > { %v2391_v58 = vpop.eup %2390 }
 0x385   : > { %v2393_v60 = vpop.eup %2392 }
 0x3a3   : > { %v1437_v45 = vpop.f32.mrf.mxu0 }
 0x3a4   : > { %v1483_v46 = vpop.f32.mrf.mxu1  ;;  %v1585_v59 = vmul.f32 %v2389_v56, %v1437_v45 }
 0x3a5   : > { %v2252_v47 = vpop.f32.mrf.mxu0  ;;  %v1586_v63 = vmul.f32 %v2391_v58, %v1483_v46 }
 0x3a6   : > { %v2258_v48 = vpop.f32.mrf.mxu1 }
 0x3a7   : > { %v1440_v49 = vpop.f32.mrf.mxu0 }
 0x3a8   : > { %v1486_v50 = vpop.f32.mrf.mxu1 }
 0x3a9   : > { %v2253_v51 = vpop.f32.mrf.mxu0 }
 0x3aa   : > { %v2259_v52 = vpop.f32.mrf.mxu1 }
 0x3ab   : > { %v1529_v54 = vpop.f32.mrf.mxu0  ;;  %v2153_v52 = vld [vmem:[%s2906_s7] ss:$0 sm:$0xff] }
 0x3ac   : > { %v1587_v55 = vmul.f32 %v2387_v53, %v1529_v54 }
 0x3ad   : > { %v2264_v57 = vpop.f32.mrf.mxu0 }
 0x3ae   : > { %v1589_v0 = vcombine.low %v1585_v59, %v1587_v55  ;;  %v1590_v2 = vcombine.high %v1585_v59, %v1587_v55 }
 0x3af   : > { %v1532_v61 = vpop.f32.mrf.mxu0  ;;  %v1575_v62 = vpop.f32.mrf.mxu1 }
 0x3b0   : > { %v1588_v3 = vmul.f32 %v2393_v60, %v1575_v62  ;;  %v1597_v10 = vrot.slane %v1589_v0, %v2674_v31  ;;  %v1604_v11 = vrot.slane %v1590_v2, %v2674_v31  ;;  %v2372_v2 = vld [vmem:[%s2909_s10 + $0x8] sm:$0xff]  }
 0x3b1   : > { %v2265_v4 = vpop.f32.mrf.mxu0  ;;  %v2270_v5 = vpop.f32.mrf.mxu1  ;;  %2281 = vmatpush3.bf16.msra.mxu1 %v2372_v2 }
 0x3b2   : > { %v1605_v7 = vcombine.low %v1586_v63, %v1588_v3  ;;  %v1606_v8 = vcombine.high %v1586_v63, %v1588_v3  ;;  %2282 = vmatprep.subr.bf16.mxu1 %v2476_v1  ;;  %v2374_v3 = vld [vmem:[%s2911_s12 + $0x18] sm:$0xff]   ;;  %v2375_v4 = vld [vmem:[%s2911_s12 + $0x10] sm:$0xff]  }
 0x3b3   : > { %v1578_v9 = vpop.f32.mrf.mxu1 }
 0x3b4   : > { %v1613_v12 = vrot.slane %v1605_v7, %v2674_v31  ;;  %v1620_v13 = vrot.slane %v1606_v8, %v2674_v31 }
 0x3b5   : > { %v2271_v14 = vpop.f32.mrf.mxu1 }
 0x3b6   : > { %v1621_v15 = vcombine.low %v1597_v10, %v1613_v12  ;;  %v1622_v16 = vcombine.high %v1597_v10, %v1613_v12  ;;  %v1637_v17 = vcombine.low %v1604_v11, %v1620_v13  ;;  %v1638_v18 = vcombine.high %v1604_v11, %v1620_v13  ;;  %v2157_v10 = vld [vmem:[%s2907_s8] ss:$0 sm:$0xff] }
 0x3b7   : > { %v2158_v12 = vld [vmem:[%s2908_s9] ss:$0 sm:$0xff] }
 0x3b8   : > { %v1629_v20 = vrot.slane %v1621_v15, %v2676_v37  ;;  %v1636_v21 = vrot.slane %v1622_v16, %v2676_v37  ;;  %v1645_v22 = vrot.slane %v1637_v17, %v2676_v37  ;;  %v1652_v23 = vrot.slane %v1638_v18, %v2676_v37  ;;  %v2376_v16 = vld [vmem:[%s2911_s12 + $0x8] sm:$0xff]   ;;  %v2377_v17 = vld [vmem:[%s2911_s12] sm:$0xff]  }
 0x3b9   : > { %v2159_v18 = vld [vmem:[%s2910_s11] ss:$0 sm:$0xff] }
 0x3ba   : > { %v1657_v24 = vcombine.low %v1629_v20, %v1636_v21  ;;  %v2151_v25 = vcombine.high %v1629_v20, %v1636_v21  ;;  %v1673_v26 = vcombine.low %v1645_v22, %v1652_v23  ;;  %v2152_v27 = vcombine.high %v1645_v22, %v1652_v23 }
 0x3bc   : > { %v1664_v29 = vrot.slane %v1657_v24, %v2674_v31  ;;  %v1672_v30 = vrot.slane %v2151_v25, %v2674_v31  ;;  %v1680_v32 = vrot.slane %v1673_v26, %v2674_v31  ;;  %v1688_v33 = vrot.slane %v2152_v27, %v2674_v31 }
 0x3be   : > { %v1690_v34 = vcombine.high %v1664_v29, %v1672_v30  ;;  %v1706_v35 = vcombine.high %v1680_v32, %v1688_v33  ;;  %v1689_v36 = vcombine.low %v1664_v29, %v1672_v30  ;;  %v1705_v38 = vcombine.low %v1680_v32, %v1688_v33 }
 0x3c0   : > { %v1704_v39 = vrot.slane %v1690_v34, %v2676_v37  ;;  %v1720_v40 = vrot.slane %v1706_v35, %v2676_v37  ;;  %v1697_v41 = vrot.slane %v1689_v36, %v2676_v37  ;;  %v1713_v42 = vrot.slane %v1705_v38, %v2676_v37 }
 0x3c2   : > { %v1723_v43 = vcombine.low %v1704_v39, %v1720_v40  ;;  %v1722_v44 = vcombine.high %v1697_v41, %v1713_v42  ;;  %v1721_v45 = vcombine.low %v1697_v41, %v1713_v42  ;;  %v1724_v31 = vcombine.high %v1704_v39, %v1720_v40 }
 0x3c4   : > { %1730 = vrot.lane.b32.xlu0 %v1723_v43, %s2484_s23  ;;  %1726 = vrot.lane.b32.xlu1 %v1722_v44, %s2485_s18  ;;  %v2169_v44 = vld [vmem:[%s2913_s14] ss:$0 sm:$0xff]  ;;  %s2038_s23 = sshll.u32 %s547_s4, 4  ;;  %s2039_s23 = int_to_ptr.vmem [resolvable:$true] %s2038_s23 }
 0x3c5   : > { %s2398_s27 = scalar_lea.vmem %s2039_s23, 128  ;;  %p2405_p1 = scmp.lt.s32.totalorder %s2039_s23, %s2403_s17 }
 0x3c6   : > { %p2399_p12 = scmp.ne.s32.totalorder %s2039_s23, %s2398_s27  ;;  %p2406_p2 = scmp.lt.s32.totalorder %s2404_s24, %s2398_s27 }
 0x3c8   : > { %1734 = vrot.lane.b32.xlu1 %v1724_v31, %s2486_s19  ;;  %v2170_v31 = vld [vmem:[%s2914_s15] ss:$0 sm:$0xff]  ;;  %p2400_p13 = pnand %p2399_p12, %p2613_p4  ;;  %p2407_p3 = por %p2406_p2, %p2405_p1 }
 0x3ca   : > { %p2401_p0 = pneg %p2400_p13 }
 0x3cc   : > { %p2408_p5 = pnand %p2407_p3, %p2401_p0 }
 0x436   : > { %v1727_v46 = vpop.permute.xlu1 %1726  ;;  %v1731_v47 = vpop.permute.xlu0 %1730 }
 0x437   : > { %v1737_v48 = vsel %vm1167_vm3, %v1721_v45, %v1727_v46 }
 0x438   : > { %v1739_v50 = vsel %vm1738_vm5, %v1737_v48, %v1731_v47 }
 0x43a   : > { %v1735_v49 = vpop.permute.xlu1 %1734 }
 0x43b   : > { %v1741_v51 = vsel %vm1740_vm6, %v1739_v50, %v1735_v49 }
 0x43c   : > { %v1742_v37 = vpack.c.bf16 %v1741_v51, %v1741_v51 }
 0x43e   : > { %2277 = vmatmul.mubr.msk.bf16.vlgmr.msra.gmra.mxu0 %vm589_vm1, %v1742_v37 }
 0x43f   : > { %2296 = vmatprep.mubr.msk.bf16.mxu0 %vm2477_vm0, %v2476_v1  ;;  %2289 = vmatpush3.bf16.msra.mxu0 %v2374_v3 }
 0x440   : > { %2290 = vmatprep.subr.bf16.mxu0 %v2476_v1 }
 0x443   : > { %2291 = vmatpush3.bf16.msra.mxu0 %v2375_v4 }
 0x444   : > { %2292 = vmatprep.subr.bf16.mxu0 %v2476_v1 }
 0x447   : > { %2293 = vmatpush3.bf16.msra.mxu0 %v2376_v16 }
 0x448   : > { %2294 = vmatprep.subr.bf16.mxu0 %v2476_v1  ;;  %v2163_v1 = vld [vmem:[%s2912_s13] ss:$0 sm:$0xff] }
 0x44b   : > { %2295 = vmatpush3.bf16.msra.mxu0 %v2377_v17 }
 0x4fe   : > { %v1803_v53 = vpop.f32.mrf.mxu0 }
 0x4ff   : > { %v1804_v54 = vadd.f32 %v2153_v52, %v1803_v53 }
 0x500   : > { %v2278_v55 = vpop.f32.mrf.mxu0 }
 0x501   : > { %v1809_v56 = vadd.f32 %v1804_v54, %v2654_v6  ;;  %v2373_v6 = vld [vmem:[%s2909_s10] sm:$0xff]  }
 0x502   : > { %v1806_v57 = vpop.f32.mrf.mxu0  ;;  %2283 = vmatpush3.bf16.msra.mxu1 %v2373_v6 }
 0x503   : > { %v1810_v58 = vsel %vm589_vm1, %v1809_v56, 0.0 }
 0x504   : > { %1811 = vadd.xlane.f32.xlu1 %v1810_v58  ;;  %v2279_v59 = vpop.f32.mrf.mxu0 }
 0x58d   : > { %v1812_v60 = vpop.xlane.xlu1 %1811 }
 0x58e   : > { %v1814_v61 = vmul.f32 0.03125, %v1812_v60 }
 0x590   : > { %v1815_v62 = vsub.f32 %v1809_v56, %v1814_v61 }
 0x592   : > { %v1816_v63 = vmul.f32 %v1815_v62, %v1815_v62 }
 0x594   : > { %v1817_v0 = vsel %vm589_vm1, %v1816_v63, 0.0 }
 0x595   : > { %1818 = vadd.xlane.f32.xlu0 %v1817_v0 }
 0x61e   : > { %v1819_v5 = vpop.xlane.xlu0 %1818 }
 0x61f   : > { %v1820_v7 = vmul.f32 0.03125, %v1819_v5 }
 0x621   : > { %v1821_v8 = vadd.f32 1e-05, %v1820_v7 }
 0x623   : > { %2394 = vrsqrt.f32 %v1821_v8 }
 0x630   : > { %v2395_v9 = vpop.eup %2394 }
 0x631   : > { %v1823_v11 = vmul.f32 %v2395_v9, %v1815_v62 }
 0x633   : > { %v1831_v13 = vmul.f32 %v2157_v10, %v1823_v11 }
 0x635   : > { %v1839_v14 = vadd.f32 %v2158_v12, %v1831_v13 }
 0x637   : > { %v1840_v15 = vpack.c.bf16 %v1839_v14, %v1839_v14 }
 0x639   : > { %2285 = vmatmul.mubr.msk.bf16.vlgmr.msra.gmra.mxu1 %vm589_vm1, %v1840_v15 }
 0x6f9   : > { %v1901_v19 = vpop.f32.mrf.mxu1 }
 0x6fa   : > { %v1902_v20 = vadd.f32 %v2159_v18, %v1901_v19 }
 0x6fb   : > { %v2286_v21 = vpop.f32.mrf.mxu1 }
 0x6fc   : > { %v1907_v22 = vmax.f32 %v1902_v20, 0.0 }
 0x6fd   : > { %v1904_v23 = vpop.f32.mrf.mxu1 }
 0x6fe   : > { %v1908_v24 = vpack.c.bf16 %v1907_v22, %v1907_v22 }
 0x6ff   : > { %v2287_v25 = vpop.f32.mrf.mxu1 }
 0x700   : > { %2297 = vmatmul.mubr.msk.bf16.vlgmr.msra.gmra.mxu0 %vm1948_vm7, %v1908_v24 }
 0x7c0   : > { %v1986_v26 = vpop.f32.mrf.mxu0 }
 0x7c1   : > { %v1987_v27 = vadd.f32 %v2163_v1, %v1986_v26 }
 0x7c2   : > { %v2298_v28 = vpop.f32.mrf.mxu0 }
 0x7c3   : > { %v1992_v29 = vadd.f32 %v1987_v27, %v1839_v14 }
 0x7c4   : > { %v1989_v30 = vpop.f32.mrf.mxu0 }
 0x7c5   : > { %v1993_v32 = vsel %vm589_vm1, %v1992_v29, 0.0 }
 0x7c6   : > { %1994 = vadd.xlane.f32.xlu0 %v1993_v32  ;;  %v2299_v33 = vpop.f32.mrf.mxu0 }
 0x84f   : > { %v1995_v34 = vpop.xlane.xlu0 %1994 }
 0x850   : > { %v1996_v35 = vmul.f32 0.03125, %v1995_v34 }
 0x852   : > { %v1997_v36 = vsub.f32 %v1992_v29, %v1996_v35 }
 0x854   : > { %v1998_v38 = vmul.f32 %v1997_v36, %v1997_v36 }
 0x856   : > { %v1999_v39 = vsel %vm589_vm1, %v1998_v38, 0.0 }
 0x857   : > { %2000 = vadd.xlane.f32.xlu1 %v1999_v39 }
 0x8e0   : > { %v2001_v40 = vpop.xlane.xlu1 %2000 }
 0x8e1   : > { %v2002_v41 = vmul.f32 0.03125, %v2001_v40 }
 0x8e3   : > { %v2003_v42 = vadd.f32 1e-05, %v2002_v41 }
 0x8e5   : > { %2396 = vrsqrt.f32 %v2003_v42 }
 0x8f2   : > { %v2397_v43 = vpop.eup %2396 }
 0x8f3   : > { %v2005_v45 = vmul.f32 %v2397_v43, %v1997_v36 }
 0x8f5   : > { %v2013_v46 = vmul.f32 %v2169_v44, %v2005_v45 }
 0x8f7   : > { %v2021_v47 = vadd.f32 %v2170_v31, %v2013_v46 }
 0x8f9   : > { %2022 = vst.msk [vmem:[%s547_s4] sm:$0xff] %vm589_vm1, %v2021_v47 }
 0x8fa   : > { %2411 = shalt.err (!%p2408_p5)
}
 0x8fb   : > { %s2412_s20 = scalar_lea.hbm %s2036_s1, 128  ;;  %s2416_s25 = scalar_lea.hbm %s2915_s16, 256 }
 0x8fc   : > { %p2413_p6 = scmp.ne.s32.totalorder %s2036_s1, %s2412_s20  ;;  %p2417_p10 = scmp.lt.s32.totalorder %s2036_s1, %s2915_s16 }
 0x8fd   : > { %p2418_p11 = scmp.lt.s32.totalorder %s2416_s25, %s2412_s20 }
 0x8fe   : > { %p2414_p7 = pnand %p2413_p6, %p2613_p4 }
 0x8ff   : > { %p2419_p12 = por %p2418_p11, %p2417_p10 }
 0x900   : > { %p2415_p9 = pneg %p2414_p7 }
 0x902   : > { %p2420_p13 = pnand %p2419_p12, %p2415_p9 }
 0x904   : > { %2423 = shalt.err (!%p2420_p13)
}
 0x905   : > { %2300 = dma.vmem_to_hbm [thread:$0]  (%p2613_p4), %s2039_s23, 128, %s2036_s1, %s2024_s2  }
 0x906 PF: > { %p2306_p0 = scmp.ge.s32.totalorder %s2474_s26, 2  ;;  %s2050_s27 = sand.u32 1, %s2454_s21  }
 0x907   : > { %s2051_s28 = scalar_lea.sflag [#allocation5], %s2050_s27 }
 0x908   : > { %p2303_p1 = pnand %p2306_p0, %p2620_p8 }
 0x90a   : > { %p2304_p2 = pneg %p2303_p1 }
 0x90c   : > { %2449 = dma.done.wait (%p2304_p2), %s2051_s28, 128  }
 0x90d   : > { %2451 = vsyncadd (%p2304_p2), %s2051_s28, 4294967168  ;;  %s29_s26 = sadd.s32 1, %s2474_s26   ;;  %s2936_s17 = sld [smem:[#allocation7_spill]] }
 0x90e   : > { %p26_p3 = scmp.ge.s32.totalorder %s29_s26, 4   ;;  %s2937_s23 = sld [smem:[#allocation11_spill]] }
 0x90f   : > { %s2938_s24 = sld [smem:[#allocation8_spill]]  ;;  %s2940_s21 = smov %s2458_s22 }
 0x910   : > { %s2939_s25 = sld [smem:[#allocation9_spill]]  ;;  %28 = sbr.rel (!%p26_p3) target bundleno = 9 (0x9), region = 126 }
 0x913   : > { %s2941_s22 = smov %s2936_s17 }
 0x915   :  { %2056 = vsyncpa [#allocation5], 1 }
 0x916   :  { %2058 = vsyncpa [#allocation5 + $0x1], 1 }

</bundles_post_ra>
